<compile_context>
chip_gen: v7x
topology: tpu7x:2x2x1
jax: 0.10.0
libtpu: 0.0.40
codegen_flags: <defaults>
</compile_context>

<pallas_src>
import numpy as np
import jax
import jax.numpy as jnp
from jax import lax
from jax.experimental import pallas as pl
from jax.experimental.pallas import tpu as pltpu


# ------------------------------ fused kernel ------------------------------

def _net_kernel(xg_ref, w1_ref, b1_ref, w2_ref, b2_ref, v1_ref,
                fb1_ref, wf2_ref, fb2_ref, out_ref, h1_scr):
    NB = out_ref.shape[1]          # images handled by this grid step
    f32 = jnp.float32

    def mm(a, b):
        return jnp.dot(a, b, preferred_element_type=f32)

    # ---------------- conv1 + 2x2 maxpool + relu ----------------
    # xg_ref[0, r] is the [6*NB, 140] LHS for conv1 output rows oh = 4t + r
    # (row = t*NB + n, col = kh*28 + w).  w1_ref is the parity-concatenated
    # band [140, 256]: lanes 0..127 -> even output cols, 128..255 -> odd.
    w1 = w1_ref[...]                                   # [140, 256] bf16
    bias1 = b1_ref[...]                                # [1, 128] f32 (lanes 120..127 = 0)
    for e in range(2):                                 # pooled-row parity: p = 2t + e
        acc = mm(xg_ref[0, 2 * e], w1)                 # conv rows 4t + 2e
        m = jnp.maximum(acc[:, :128], acc[:, 128:])    # horizontal pool (lane halves)
        acc = mm(xg_ref[0, 2 * e + 1], w1)             # conv rows 4t + 2e + 1
        m = jnp.maximum(m, jnp.maximum(acc[:, :128], acc[:, 128:]))
        y1 = jnp.maximum(m + bias1, 0.0)               # vertical pool + bias + relu
        h1_scr[e] = y1.astype(jnp.bfloat16)            # [6*NB, 128] (lanes 120.. = 0)

    # ---------------- conv2 + 2x2 maxpool + relu ----------------
    # TODO(synk): stochastic training-mode Dropout2d / F.dropout omitted
    # (eval-mode identity).
    bias2 = b2_ref[...]                                # [1, 128] (lanes 80..127 = 0)
    m2 = None
    for a in range(2):                                 # conv2 output-row parity oh2 = 2p2 + a
        acc = None
        for kh in range(5):
            e = (a + kh) % 2
            st = (a + kh) // 2
            lhs = h1_scr[e, st * NB:(st + 4) * NB, :]  # [4*NB, 128] bf16 (row = p2*NB+n)
            prod = mm(lhs, w2_ref[kh])                 # [4*NB, 256] f32
            acc = prod if acc is None else acc + prod
        pm = jnp.maximum(acc[:, :128], acc[:, 128:])   # horizontal pool
        m2 = pm if m2 is None else jnp.maximum(m2, pm)  # vertical pool (incremental)
    y2 = jnp.maximum(m2 + bias2, 0.0).astype(jnp.bfloat16)   # [4*NB, 128]

    # ---------------- fc1 + relu ----------------
    hacc = mm(y2[0:NB, :], v1_ref[0])
    for p2 in range(1, 4):
        hacc = hacc + mm(y2[p2 * NB:(p2 + 1) * NB, :], v1_ref[p2])
    h = jnp.maximum(hacc + fb1_ref[...], 0.0)          # [NB, 50] f32

    # ---------------- fc2 + log_softmax ----------------
    logits = mm(h.astype(jnp.bfloat16), wf2_ref[...]) + fb2_ref[...]   # [NB, 10]
    mx = jnp.max(logits, axis=-1, keepdims=True)
    s = logits - mx
    lse = jnp.log(jnp.sum(jnp.exp(s), axis=-1, keepdims=True))
    out_ref[0] = (s - lse).astype(out_ref.dtype)


# --------------------- one-time host-side weight repack ---------------------

def prepare_params(params):
    """Repack PyTorch-layout weights into the MXU-ready banded / parity-
    concatenated / lane-padded layouts used by the fused kernel.  Done ONCE."""
    w1 = params["conv1_w"]        # [10, 1, 5, 5]  (oc, ic, kh, kw)
    w2 = params["conv2_w"]        # [20, 10, 5, 5]
    f1w = params["fc1_w"]         # [50, 320]
    f2w = params["fc2_w"]         # [10, 50]

    # conv1 band: w1band[b, kh*28 + w', q*10 + oc] = w1[oc,0,kh, w'-(2q+b)]
    s1 = np.zeros((2, 28, 12, 5), np.float32)
    for b in range(2):
        for q in range(12):
            for kw in range(5):
                s1[b, 2 * q + b + kw, q, kw] = 1.0
    w1band = jnp.einsum("bwqk,ohk->bhwqo", jnp.asarray(s1), w1[:, 0])
    w1band = w1band.reshape(2, 140, 120)
    # parity-concat along N, each parity lane-padded 120 -> 128  => [140, 256]
    w1cat = jnp.concatenate(
        [jnp.pad(w1band[0], ((0, 0), (0, 8))),
         jnp.pad(w1band[1], ((0, 0), (0, 8)))], axis=1)

    # conv2 band: w2band[b2, kh, q*10+ic, q2*20+oc2] = w2[oc2,ic,kh, q-(2q2+b2)]
    s2 = np.zeros((2, 12, 4, 5), np.float32)
    for b in range(2):
        for q2 in range(4):
            for kw in range(5):
                s2[b, 2 * q2 + b + kw, q2, kw] = 1.0
    w2band = jnp.einsum("bqrk,oihk->bhqiro", jnp.asarray(s2), w2)
    w2band = w2band.reshape(2, 5, 120, 80)
    # K padded 120 -> 128, each parity's N padded 80 -> 128, parity-concat
    # along N  => [5, 128, 256]
    w2cat = jnp.concatenate(
        [jnp.pad(w2band[0], ((0, 0), (0, 8), (0, 48))),
         jnp.pad(w2band[1], ((0, 0), (0, 8), (0, 48)))], axis=2)

    # fc1: fold the NCHW view(-1,320) flatten into a row permutation, split by
    # pooled row p2: v_fc1[p2, q2*20+oc2, j] = fc1_w[j, oc2*16 + p2*4 + q2];
    # rows padded 80 -> 128 with zeros (matches y2's padded lanes).
    v_fc1 = jnp.transpose(f1w.reshape(50, 20, 4, 4), (2, 3, 1, 0)).reshape(4, 80, 50)
    v_fc1 = jnp.pad(v_fc1, ((0, 0), (0, 48), (0, 0)))

    return {
        "w1cat": w1cat.astype(jnp.bfloat16),
        "b1t": jnp.pad(jnp.tile(params["conv1_b"], 12), (0, 8))
                 .reshape(1, 128).astype(jnp.float32),
        "w2cat": w2cat.astype(jnp.bfloat16),
        "b2t": jnp.pad(jnp.tile(params["conv2_b"], 4), (0, 48))
                 .reshape(1, 128).astype(jnp.float32),
        "v_fc1": v_fc1.astype(jnp.bfloat16),
        "fc1_b": params["fc1_b"].reshape(1, 50).astype(jnp.float32),
        "w_fc2": f2w.T.astype(jnp.bfloat16),
        "fc2_b": params["fc2_b"].reshape(1, 10).astype(jnp.float32),
    }


# ------------------------------ forward pass ------------------------------

def _round_up(v, m):
    return ((v + m - 1) // m) * m


def _prep_inputs(x_nchw, NB):
    """Single tiny gather (done in bf16): xg[i, r, t*NB+n, kh*28+w] =
    x[i*NB+n, 4t+r+kh, w].  Gives the kernel one contiguous, lane-dense 2-D
    LHS slab per conv1 output row phase r."""
    N = x_nchw.shape[0]
    x = x_nchw.reshape(N, 28, 28).astype(jnp.bfloat16)   # cast BEFORE the gather
    nb = pl.cdiv(N, NB)
    Np = nb * NB
    if Np != N:
        x = jnp.concatenate([x, jnp.zeros((Np - N, 28, 28), x.dtype)], axis=0)
    idx = np.array([[[4 * t + r + kh for kh in range(5)]
                     for t in range(6)] for r in range(4)])        # [4, 6, 5]
    xg = x.reshape(nb, NB, 28, 28)[:, :, idx, :]                   # [nb,NB,4,6,5,28]
    xg = jnp.transpose(xg, (0, 2, 3, 1, 4, 5))                     # [nb,4,6,NB,5,28]
    xg = xg.reshape(nb, 4, 6 * NB, 140)
    return xg, nb, Np


def net_forward(x_nchw, prep, block_n=128):
    # block_n: batch rows per grid step.  128 is a good default for v5e;
    # 256 fills the 256-wide MXUs on v6e/v7x even better.
    N = x_nchw.shape[0]
    NB = min(_round_up(block_n, 16), _round_up(N, 16))   # always a multiple of 16
    xg, nb, Np = _prep_inputs(x_nchw, NB)

    kernel = pl.pallas_call(
        _net_kernel,
        out_shape=jax.ShapeDtypeStruct((nb, NB, 10), jnp.float32),
        grid_spec=pltpu.PrefetchScalarGridSpec(
            num_scalar_prefetch=0,
            grid=(nb,),
            in_specs=[
                pl.BlockSpec((1, 4, 6 * NB, 140), lambda i: (i, 0, 0, 0)),  # xg
                pl.BlockSpec((140, 256), lambda i: (0, 0)),                 # conv1 band (parity-concat)
                pl.BlockSpec((1, 128), lambda i: (0, 0)),                   # conv1 bias (tiled+pad)
                pl.BlockSpec((5, 128, 256), lambda i: (0, 0, 0)),           # conv2 band (parity-concat)
                pl.BlockSpec((1, 128), lambda i: (0, 0)),                   # conv2 bias (tiled+pad)
                pl.BlockSpec((4, 128, 50), lambda i: (0, 0, 0)),            # fc1 (permuted+pad)
                pl.BlockSpec((1, 50), lambda i: (0, 0)),                    # fc1 bias
                pl.BlockSpec((50, 10), lambda i: (0, 0)),                   # fc2 weight
                pl.BlockSpec((1, 10), lambda i: (0, 0)),                    # fc2 bias
            ],
            out_specs=pl.BlockSpec((1, NB, 10), lambda i: (i, 0, 0)),
            scratch_shapes=[pltpu.VMEM((2, 6 * NB, 128), jnp.bfloat16)],
        ),
        compiler_params=pltpu.CompilerParams(
            dimension_semantics=("parallel",),
            vmem_limit_bytes=32 * 1024 * 1024),
    )
    out = kernel(xg, prep["w1cat"], prep["b1t"], prep["w2cat"], prep["b2t"],
                 prep["v_fc1"], prep["fc1_b"], prep["w_fc2"], prep["fc2_b"])
    return out.reshape(Np, 10)[:N]


# --------------------------- plain-JAX reference ---------------------------

def reference_forward(x_nchw, params):
    y = lax.conv_general_dilated(
        x_nchw.astype(jnp.float32), params["conv1_w"], (1, 1), "VALID",
        dimension_numbers=("NCHW", "OIHW", "NCHW"))
    y = y + params["conv1_b"][None, :, None, None]
    n, c, h, w = y.shape
    y = jnp.maximum(y.reshape(n, c, h // 2, 2, w // 2, 2).max(axis=(3, 5)), 0.0)
    y = lax.conv_general_dilated(
        y, params["conv2_w"], (1, 1), "VALID",
        dimension_numbers=("NCHW", "OIHW", "NCHW"))
    y = y + params["conv2_b"][None, :, None, None]
    n, c, h, w = y.shape
    y = jnp.maximum(y.reshape(n, c, h // 2, 2, w // 2, 2).max(axis=(3, 5)), 0.0)
    feat = y.reshape(n, 320)
    hid = jnp.maximum(feat @ params["fc1_w"].T + params["fc1_b"], 0.0)
    logits = hid @ params["fc2_w"].T + params["fc2_b"]
    return jax.nn.log_softmax(logits, axis=1)


# --------------------------- deterministic params ---------------------------

def init_params(key):
    ks = jax.random.split(key, 8)

    def u(k, shape, fan_in):
        bound = 1.0 / float(fan_in) ** 0.5
        return jax.random.uniform(k, shape, jnp.float32, -bound, bound)

    return {
        "conv1_w": u(ks[0], (10, 1, 5, 5), 25),     # PyTorch [oc, ic, kh, kw]
        "conv1_b": u(ks[1], (10,), 25),
        "conv2_w": u(ks[2], (20, 10, 5, 5), 250),
        "conv2_b": u(ks[3], (20,), 250),
        "fc1_w":  u(ks[4], (50, 320), 320),          # PyTorch [out, in]
        "fc1_b":  u(ks[5], (50,), 320),
        "fc2_w":  u(ks[6], (10, 50), 50),
        "fc2_b":  u(ks[7], (10,), 50),
    }


if __name__ == "__main__":
    key = jax.random.PRNGKey(0)
    pkey, xkey = jax.random.split(key)
    params = init_params(pkey)
    # MNIST-like input: batch=2, channels=1, spatial=28x28 (forward implies 28x28).
    x = jax.random.normal(xkey, (2, 1, 28, 28), jnp.float32)

    prep = prepare_params(params)              # one-time weight repack
    fwd = jax.jit(net_forward)
    out = jax.block_until_ready(fwd(x, prep))

    assert out.shape == (2, 10) and out.dtype == jnp.float32
    # log_softmax rows must exp-sum to ~1
    assert bool(jnp.all(jnp.abs(jnp.sum(jnp.exp(out), axis=1) - 1.0) < 1e-4))
    # match the plain-JAX f32 reference (loose tol: bf16 MXU inputs)
    ref = reference_forward(x, params)
    assert float(jnp.max(jnp.abs(out - ref))) < 0.3
    print("KERNEL_OK")
</pallas_src>

<mosaic_0001>
module attributes {stable_mosaic.version = 11 : i64} {
  func.func @_net_kernel(%arg0: i32, %arg1: memref<1x4x96x140xbf16, #tpu.memory_space<vmem>>, %arg2: memref<140x256xbf16, #tpu.memory_space<vmem>>, %arg3: memref<1x128xf32, #tpu.memory_space<vmem>>, %arg4: memref<5x128x256xbf16, #tpu.memory_space<vmem>>, %arg5: memref<1x128xf32, #tpu.memory_space<vmem>>, %arg6: memref<4x128x50xbf16, #tpu.memory_space<vmem>>, %arg7: memref<1x50xf32, #tpu.memory_space<vmem>>, %arg8: memref<50x10xbf16, #tpu.memory_space<vmem>>, %arg9: memref<1x10xf32, #tpu.memory_space<vmem>>, %arg10: memref<1x16x10xf32, #tpu.memory_space<vmem>>, %arg11: memref<2x96x128xbf16, #tpu.memory_space<vmem>>) attributes {dimension_semantics = [#tpu.dimension_semantics<parallel>], iteration_bounds = array<i64: 1>, scalar_prefetch = 0 : i64, scratch_operands = 1 : i64, tpu.core_type = #tpu.core_type<tc>, window_params = [{transform_indices = @transform_0, window_bounds = array<i64: 1, 4, 96, 140>}, {pipeline_mode = #tpu.pipeline_mode<synchronous>, transform_indices = @transform_1, window_bounds = array<i64: 140, 256>}, {pipeline_mode = #tpu.pipeline_mode<synchronous>, transform_indices = @transform_2, window_bounds = array<i64: 1, 128>}, {pipeline_mode = #tpu.pipeline_mode<synchronous>, transform_indices = @transform_3, window_bounds = array<i64: 5, 128, 256>}, {pipeline_mode = #tpu.pipeline_mode<synchronous>, transform_indices = @transform_4, window_bounds = array<i64: 1, 128>}, {pipeline_mode = #tpu.pipeline_mode<synchronous>, transform_indices = @transform_5, window_bounds = array<i64: 4, 128, 50>}, {pipeline_mode = #tpu.pipeline_mode<synchronous>, transform_indices = @transform_6, window_bounds = array<i64: 1, 50>}, {pipeline_mode = #tpu.pipeline_mode<synchronous>, transform_indices = @transform_7, window_bounds = array<i64: 50, 10>}, {pipeline_mode = #tpu.pipeline_mode<synchronous>, transform_indices = @transform_8, window_bounds = array<i64: 1, 10>}, {transform_indices = @transform_9, window_bounds = array<i64: 1, 16, 10>}]} {
    %c0 = arith.constant 0 : index
    %c0_0 = arith.constant 0 : index
    %0 = vector.load %arg2[%c0, %c0_0] : memref<140x256xbf16, #tpu.memory_space<vmem>>, vector<140x256xbf16>
    %c0_1 = arith.constant 0 : index
    %c0_2 = arith.constant 0 : index
    %1 = vector.load %arg3[%c0_1, %c0_2] : memref<1x128xf32, #tpu.memory_space<vmem>>, vector<1x128xf32>
    %c0_3 = arith.constant 0 : index
    %c0_4 = arith.constant 0 : index
    %c0_5 = arith.constant 0 : index
    %c0_6 = arith.constant 0 : index
    %2 = vector.load %arg1[%c0_3, %c0_4, %c0_5, %c0_6] : memref<1x4x96x140xbf16, #tpu.memory_space<vmem>>, vector<1x1x96x140xbf16>
    %3 = vector.shape_cast %2 : vector<1x1x96x140xbf16> to vector<96x140xbf16>
    %cst = arith.constant dense<0.000000e+00> : vector<96x256xf32>
    %4 = tpu.matmul %3, %0, %cst {dimension_numbers = #tpu.dot_dimension_numbers<[1], [0], [0], [1], [0, 0, 1, 1], [], []>} : vector<96x140xbf16>, vector<140x256xbf16>, vector<96x256xf32> -> vector<96x256xf32>
    %5 = vector.extract_strided_slice %4 {offsets = [0, 0], sizes = [96, 128], strides = [1, 1]} : vector<96x256xf32> to vector<96x128xf32>
    %6 = vector.extract_strided_slice %4 {offsets = [0, 128], sizes = [96, 128], strides = [1, 1]} : vector<96x256xf32> to vector<96x128xf32>
    %7 = arith.maximumf %5, %6 : vector<96x128xf32>
    %c0_7 = arith.constant 0 : index
    %c1 = arith.constant 1 : index
    %c0_8 = arith.constant 0 : index
    %c0_9 = arith.constant 0 : index
    %8 = vector.load %arg1[%c0_7, %c1, %c0_8, %c0_9] : memref<1x4x96x140xbf16, #tpu.memory_space<vmem>>, vector<1x1x96x140xbf16>
    %9 = vector.shape_cast %8 : vector<1x1x96x140xbf16> to vector<96x140xbf16>
    %cst_10 = arith.constant dense<0.000000e+00> : vector<96x256xf32>
    %10 = tpu.matmul %9, %0, %cst_10 {dimension_numbers = #tpu.dot_dimension_numbers<[1], [0], [0], [1], [0, 0, 1, 1], [], []>} : vector<96x140xbf16>, vector<140x256xbf16>, vector<96x256xf32> -> vector<96x256xf32>
    %11 = vector.extract_strided_slice %10 {offsets = [0, 0], sizes = [96, 128], strides = [1, 1]} : vector<96x256xf32> to vector<96x128xf32>
    %12 = vector.extract_strided_slice %10 {offsets = [0, 128], sizes = [96, 128], strides = [1, 1]} : vector<96x256xf32> to vector<96x128xf32>
    %13 = arith.maximumf %11, %12 : vector<96x128xf32>
    %14 = arith.maximumf %7, %13 : vector<96x128xf32>
    %15 = vector.broadcast %1 : vector<1x128xf32> to vector<96x128xf32>
    %16 = arith.addf %14, %15 : vector<96x128xf32>
    %cst_11 = arith.constant 0.000000e+00 : f32
    %17 = vector.broadcast %cst_11 : f32 to vector<96x128xf32>
    %18 = arith.maximumf %16, %17 : vector<96x128xf32>
    %19 = arith.truncf %18 : vector<96x128xf32> to vector<96x128xbf16>
    %c0_12 = arith.constant 0 : index
    %c0_13 = arith.constant 0 : index
    %c0_14 = arith.constant 0 : index
    %20 = vector.load %arg11[%c0_12, %c0_13, %c0_14] : memref<2x96x128xbf16, #tpu.memory_space<vmem>>, vector<1x96x128xbf16>
    %21 = vector.shape_cast %20 : vector<1x96x128xbf16> to vector<96x128xbf16>
    %22 = vector.shape_cast %19 : vector<96x128xbf16> to vector<1x96x128xbf16>
    tpu.vector_store %arg11[%c0_12, %c0_13, %c0_14], %22 {strides = array<i32>} : memref<2x96x128xbf16, #tpu.memory_space<vmem>>, vector<1x96x128xbf16>,
    %c0_15 = arith.constant 0 : index
    %c2 = arith.constant 2 : index
    %c0_16 = arith.constant 0 : index
    %c0_17 = arith.constant 0 : index
    %23 = vector.load %arg1[%c0_15, %c2, %c0_16, %c0_17] : memref<1x4x96x140xbf16, #tpu.memory_space<vmem>>, vector<1x1x96x140xbf16>
    %24 = vector.shape_cast %23 : vector<1x1x96x140xbf16> to vector<96x140xbf16>
    %cst_18 = arith.constant dense<0.000000e+00> : vector<96x256xf32>
    %25 = tpu.matmul %24, %0, %cst_18 {dimension_numbers = #tpu.dot_dimension_numbers<[1], [0], [0], [1], [0, 0, 1, 1], [], []>} : vector<96x140xbf16>, vector<140x256xbf16>, vector<96x256xf32> -> vector<96x256xf32>
    %26 = vector.extract_strided_slice %25 {offsets = [0, 0], sizes = [96, 128], strides = [1, 1]} : vector<96x256xf32> to vector<96x128xf32>
    %27 = vector.extract_strided_slice %25 {offsets = [0, 128], sizes = [96, 128], strides = [1, 1]} : vector<96x256xf32> to vector<96x128xf32>
    %28 = arith.maximumf %26, %27 : vector<96x128xf32>
    %c0_19 = arith.constant 0 : index
    %c3 = arith.constant 3 : index
    %c0_20 = arith.constant 0 : index
    %c0_21 = arith.constant 0 : index
    %29 = vector.load %arg1[%c0_19, %c3, %c0_20, %c0_21] : memref<1x4x96x140xbf16, #tpu.memory_space<vmem>>, vector<1x1x96x140xbf16>
    %30 = vector.shape_cast %29 : vector<1x1x96x140xbf16> to vector<96x140xbf16>
    %cst_22 = arith.constant dense<0.000000e+00> : vector<96x256xf32>
    %31 = tpu.matmul %30, %0, %cst_22 {dimension_numbers = #tpu.dot_dimension_numbers<[1], [0], [0], [1], [0, 0, 1, 1], [], []>} : vector<96x140xbf16>, vector<140x256xbf16>, vector<96x256xf32> -> vector<96x256xf32>
    %32 = vector.extract_strided_slice %31 {offsets = [0, 0], sizes = [96, 128], strides = [1, 1]} : vector<96x256xf32> to vector<96x128xf32>
    %33 = vector.extract_strided_slice %31 {offsets = [0, 128], sizes = [96, 128], strides = [1, 1]} : vector<96x256xf32> to vector<96x128xf32>
    %34 = arith.maximumf %32, %33 : vector<96x128xf32>
    %35 = arith.maximumf %28, %34 : vector<96x128xf32>
    %36 = vector.broadcast %1 : vector<1x128xf32> to vector<96x128xf32>
    %37 = arith.addf %35, %36 : vector<96x128xf32>
    %cst_23 = arith.constant 0.000000e+00 : f32
    %38 = vector.broadcast %cst_23 : f32 to vector<96x128xf32>
    %39 = arith.maximumf %37, %38 : vector<96x128xf32>
    %40 = arith.truncf %39 : vector<96x128xf32> to vector<96x128xbf16>
    %c1_24 = arith.constant 1 : index
    %c0_25 = arith.constant 0 : index
    %c0_26 = arith.constant 0 : index
    %41 = vector.load %arg11[%c1_24, %c0_25, %c0_26] : memref<2x96x128xbf16, #tpu.memory_space<vmem>>, vector<1x96x128xbf16>
    %42 = vector.shape_cast %41 : vector<1x96x128xbf16> to vector<96x128xbf16>
    %43 = vector.shape_cast %40 : vector<96x128xbf16> to vector<1x96x128xbf16>
    tpu.vector_store %arg11[%c1_24, %c0_25, %c0_26], %43 {strides = array<i32>} : memref<2x96x128xbf16, #tpu.memory_space<vmem>>, vector<1x96x128xbf16>,
    %c0_27 = arith.constant 0 : index
    %c0_28 = arith.constant 0 : index
    %44 = vector.load %arg5[%c0_27, %c0_28] : memref<1x128xf32, #tpu.memory_space<vmem>>, vector<1x128xf32>
    %c0_29 = arith.constant 0 : index
    %c0_30 = arith.constant 0 : index
    %c0_31 = arith.constant 0 : index
    %45 = vector.load %arg11[%c0_29, %c0_30, %c0_31] : memref<2x96x128xbf16, #tpu.memory_space<vmem>>, vector<1x64x128xbf16>
    %46 = vector.shape_cast %45 : vector<1x64x128xbf16> to vector<64x128xbf16>
    %c0_32 = arith.constant 0 : index
    %c0_33 = arith.constant 0 : index
    %c0_34 = arith.constant 0 : index
    %47 = vector.load %arg4[%c0_32, %c0_33, %c0_34] : memref<5x128x256xbf16, #tpu.memory_space<vmem>>, vector<1x128x256xbf16>
    %48 = vector.shape_cast %47 : vector<1x128x256xbf16> to vector<128x256xbf16>
    %cst_35 = arith.constant dense<0.000000e+00> : vector<64x256xf32>
    %49 = tpu.matmul %46, %48, %cst_35 {dimension_numbers = #tpu.dot_dimension_numbers<[1], [0], [0], [1], [0, 0, 1, 1], [], []>} : vector<64x128xbf16>, vector<128x256xbf16>, vector<64x256xf32> -> vector<64x256xf32>
    %c1_36 = arith.constant 1 : index
    %c0_37 = arith.constant 0 : index
    %c0_38 = arith.constant 0 : index
    %50 = vector.load %arg11[%c1_36, %c0_37, %c0_38] : memref<2x96x128xbf16, #tpu.memory_space<vmem>>, vector<1x64x128xbf16>
    %51 = vector.shape_cast %50 : vector<1x64x128xbf16> to vector<64x128xbf16>
    %c1_39 = arith.constant 1 : index
    %c0_40 = arith.constant 0 : index
    %c0_41 = arith.constant 0 : index
    %52 = vector.load %arg4[%c1_39, %c0_40, %c0_41] : memref<5x128x256xbf16, #tpu.memory_space<vmem>>, vector<1x128x256xbf16>
    %53 = vector.shape_cast %52 : vector<1x128x256xbf16> to vector<128x256xbf16>
    %cst_42 = arith.constant dense<0.000000e+00> : vector<64x256xf32>
    %54 = tpu.matmul %51, %53, %cst_42 {dimension_numbers = #tpu.dot_dimension_numbers<[1], [0], [0], [1], [0, 0, 1, 1], [], []>} : vector<64x128xbf16>, vector<128x256xbf16>, vector<64x256xf32> -> vector<64x256xf32>
    %55 = arith.addf %49, %54 : vector<64x256xf32>
    %c0_43 = arith.constant 0 : index
    %c16 = arith.constant 16 : index
    %c0_44 = arith.constant 0 : index
    %56 = vector.load %arg11[%c0_43, %c16, %c0_44] : memref<2x96x128xbf16, #tpu.memory_space<vmem>>, vector<1x64x128xbf16>
    %57 = vector.shape_cast %56 : vector<1x64x128xbf16> to vector<64x128xbf16>
    %c2_45 = arith.constant 2 : index
    %c0_46 = arith.constant 0 : index
    %c0_47 = arith.constant 0 : index
    %58 = vector.load %arg4[%c2_45, %c0_46, %c0_47] : memref<5x128x256xbf16, #tpu.memory_space<vmem>>, vector<1x128x256xbf16>
    %59 = vector.shape_cast %58 : vector<1x128x256xbf16> to vector<128x256xbf16>
    %cst_48 = arith.constant dense<0.000000e+00> : vector<64x256xf32>
    %60 = tpu.matmul %57, %59, %cst_48 {dimension_numbers = #tpu.dot_dimension_numbers<[1], [0], [0], [1], [0, 0, 1, 1], [], []>} : vector<64x128xbf16>, vector<128x256xbf16>, vector<64x256xf32> -> vector<64x256xf32>
    %61 = arith.addf %55, %60 : vector<64x256xf32>
    %c1_49 = arith.constant 1 : index
    %c16_50 = arith.constant 16 : index
    %c0_51 = arith.constant 0 : index
    %62 = vector.load %arg11[%c1_49, %c16_50, %c0_51] : memref<2x96x128xbf16, #tpu.memory_space<vmem>>, vector<1x64x128xbf16>
    %63 = vector.shape_cast %62 : vector<1x64x128xbf16> to vector<64x128xbf16>
    %c3_52 = arith.constant 3 : index
    %c0_53 = arith.constant 0 : index
    %c0_54 = arith.constant 0 : index
    %64 = vector.load %arg4[%c3_52, %c0_53, %c0_54] : memref<5x128x256xbf16, #tpu.memory_space<vmem>>, vector<1x128x256xbf16>
    %65 = vector.shape_cast %64 : vector<1x128x256xbf16> to vector<128x256xbf16>
    %cst_55 = arith.constant dense<0.000000e+00> : vector<64x256xf32>
    %66 = tpu.matmul %63, %65, %cst_55 {dimension_numbers = #tpu.dot_dimension_numbers<[1], [0], [0], [1], [0, 0, 1, 1], [], []>} : vector<64x128xbf16>, vector<128x256xbf16>, vector<64x256xf32> -> vector<64x256xf32>
    %67 = arith.addf %61, %66 : vector<64x256xf32>
    %c0_56 = arith.constant 0 : index
    %c32 = arith.constant 32 : index
    %c0_57 = arith.constant 0 : index
    %68 = vector.load %arg11[%c0_56, %c32, %c0_57] : memref<2x96x128xbf16, #tpu.memory_space<vmem>>, vector<1x64x128xbf16>
    %69 = vector.shape_cast %68 : vector<1x64x128xbf16> to vector<64x128xbf16>
    %c4 = arith.constant 4 : index
    %c0_58 = arith.constant 0 : index
    %c0_59 = arith.constant 0 : index
    %70 = vector.load %arg4[%c4, %c0_58, %c0_59] : memref<5x128x256xbf16, #tpu.memory_space<vmem>>, vector<1x128x256xbf16>
    %71 = vector.shape_cast %70 : vector<1x128x256xbf16> to vector<128x256xbf16>
    %cst_60 = arith.constant dense<0.000000e+00> : vector<64x256xf32>
    %72 = tpu.matmul %69, %71, %cst_60 {dimension_numbers = #tpu.dot_dimension_numbers<[1], [0], [0], [1], [0, 0, 1, 1], [], []>} : vector<64x128xbf16>, vector<128x256xbf16>, vector<64x256xf32> -> vector<64x256xf32>
    %73 = arith.addf %67, %72 : vector<64x256xf32>
    %74 = vector.extract_strided_slice %73 {offsets = [0, 0], sizes = [64, 128], strides = [1, 1]} : vector<64x256xf32> to vector<64x128xf32>
    %75 = vector.extract_strided_slice %73 {offsets = [0, 128], sizes = [64, 128], strides = [1, 1]} : vector<64x256xf32> to vector<64x128xf32>
    %76 = arith.maximumf %74, %75 : vector<64x128xf32>
    %c1_61 = arith.constant 1 : index
    %c0_62 = arith.constant 0 : index
    %c0_63 = arith.constant 0 : index
    %77 = vector.load %arg11[%c1_61, %c0_62, %c0_63] : memref<2x96x128xbf16, #tpu.memory_space<vmem>>, vector<1x64x128xbf16>
    %78 = vector.shape_cast %77 : vector<1x64x128xbf16> to vector<64x128xbf16>
    %c0_64 = arith.constant 0 : index
    %c0_65 = arith.constant 0 : index
    %c0_66 = arith.constant 0 : index
    %79 = vector.load %arg4[%c0_64, %c0_65, %c0_66] : memref<5x128x256xbf16, #tpu.memory_space<vmem>>, vector<1x128x256xbf16>
    %80 = vector.shape_cast %79 : vector<1x128x256xbf16> to vector<128x256xbf16>
    %cst_67 = arith.constant dense<0.000000e+00> : vector<64x256xf32>
    %81 = tpu.matmul %78, %80, %cst_67 {dimension_numbers = #tpu.dot_dimension_numbers<[1], [0], [0], [1], [0, 0, 1, 1], [], []>} : vector<64x128xbf16>, vector<128x256xbf16>, vector<64x256xf32> -> vector<64x256xf32>
    %c0_68 = arith.constant 0 : index
    %c16_69 = arith.constant 16 : index
    %c0_70 = arith.constant 0 : index
    %82 = vector.load %arg11[%c0_68, %c16_69, %c0_70] : memref<2x96x128xbf16, #tpu.memory_space<vmem>>, vector<1x64x128xbf16>
    %83 = vector.shape_cast %82 : vector<1x64x128xbf16> to vector<64x128xbf16>
    %c1_71 = arith.constant 1 : index
    %c0_72 = arith.constant 0 : index
    %c0_73 = arith.constant 0 : index
    %84 = vector.load %arg4[%c1_71, %c0_72, %c0_73] : memref<5x128x256xbf16, #tpu.memory_space<vmem>>, vector<1x128x256xbf16>
    %85 = vector.shape_cast %84 : vector<1x128x256xbf16> to vector<128x256xbf16>
    %cst_74 = arith.constant dense<0.000000e+00> : vector<64x256xf32>
    %86 = tpu.matmul %83, %85, %cst_74 {dimension_numbers = #tpu.dot_dimension_numbers<[1], [0], [0], [1], [0, 0, 1, 1], [], []>} : vector<64x128xbf16>, vector<128x256xbf16>, vector<64x256xf32> -> vector<64x256xf32>
    %87 = arith.addf %81, %86 : vector<64x256xf32>
    %c1_75 = arith.constant 1 : index
    %c16_76 = arith.constant 16 : index
    %c0_77 = arith.constant 0 : index
    %88 = vector.load %arg11[%c1_75, %c16_76, %c0_77] : memref<2x96x128xbf16, #tpu.memory_space<vmem>>, vector<1x64x128xbf16>
    %89 = vector.shape_cast %88 : vector<1x64x128xbf16> to vector<64x128xbf16>
    %c2_78 = arith.constant 2 : index
    %c0_79 = arith.constant 0 : index
    %c0_80 = arith.constant 0 : index
    %90 = vector.load %arg4[%c2_78, %c0_79, %c0_80] : memref<5x128x256xbf16, #tpu.memory_space<vmem>>, vector<1x128x256xbf16>
    %91 = vector.shape_cast %90 : vector<1x128x256xbf16> to vector<128x256xbf16>
    %cst_81 = arith.constant dense<0.000000e+00> : vector<64x256xf32>
    %92 = tpu.matmul %89, %91, %cst_81 {dimension_numbers = #tpu.dot_dimension_numbers<[1], [0], [0], [1], [0, 0, 1, 1], [], []>} : vector<64x128xbf16>, vector<128x256xbf16>, vector<64x256xf32> -> vector<64x256xf32>
    %93 = arith.addf %87, %92 : vector<64x256xf32>
    %c0_82 = arith.constant 0 : index
    %c32_83 = arith.constant 32 : index
    %c0_84 = arith.constant 0 : index
    %94 = vector.load %arg11[%c0_82, %c32_83, %c0_84] : memref<2x96x128xbf16, #tpu.memory_space<vmem>>, vector<1x64x128xbf16>
    %95 = vector.shape_cast %94 : vector<1x64x128xbf16> to vector<64x128xbf16>
    %c3_85 = arith.constant 3 : index
    %c0_86 = arith.constant 0 : index
    %c0_87 = arith.constant 0 : index
    %96 = vector.load %arg4[%c3_85, %c0_86, %c0_87] : memref<5x128x256xbf16, #tpu.memory_space<vmem>>, vector<1x128x256xbf16>
    %97 = vector.shape_cast %96 : vector<1x128x256xbf16> to vector<128x256xbf16>
    %cst_88 = arith.constant dense<0.000000e+00> : vector<64x256xf32>
    %98 = tpu.matmul %95, %97, %cst_88 {dimension_numbers = #tpu.dot_dimension_numbers<[1], [0], [0], [1], [0, 0, 1, 1], [], []>} : vector<64x128xbf16>, vector<128x256xbf16>, vector<64x256xf32> -> vector<64x256xf32>
    %99 = arith.addf %93, %98 : vector<64x256xf32>
    %c1_89 = arith.constant 1 : index
    %c32_90 = arith.constant 32 : index
    %c0_91 = arith.constant 0 : index
    %100 = vector.load %arg11[%c1_89, %c32_90, %c0_91] : memref<2x96x128xbf16, #tpu.memory_space<vmem>>, vector<1x64x128xbf16>
    %101 = vector.shape_cast %100 : vector<1x64x128xbf16> to vector<64x128xbf16>
    %c4_92 = arith.constant 4 : index
    %c0_93 = arith.constant 0 : index
    %c0_94 = arith.constant 0 : index
    %102 = vector.load %arg4[%c4_92, %c0_93, %c0_94] : memref<5x128x256xbf16, #tpu.memory_space<vmem>>, vector<1x128x256xbf16>
    %103 = vector.shape_cast %102 : vector<1x128x256xbf16> to vector<128x256xbf16>
    %cst_95 = arith.constant dense<0.000000e+00> : vector<64x256xf32>
    %104 = tpu.matmul %101, %103, %cst_95 {dimension_numbers = #tpu.dot_dimension_numbers<[1], [0], [0], [1], [0, 0, 1, 1], [], []>} : vector<64x128xbf16>, vector<128x256xbf16>, vector<64x256xf32> -> vector<64x256xf32>
    %105 = arith.addf %99, %104 : vector<64x256xf32>
    %106 = vector.extract_strided_slice %105 {offsets = [0, 0], sizes = [64, 128], strides = [1, 1]} : vector<64x256xf32> to vector<64x128xf32>
    %107 = vector.extract_strided_slice %105 {offsets = [0, 128], sizes = [64, 128], strides = [1, 1]} : vector<64x256xf32> to vector<64x128xf32>
    %108 = arith.maximumf %106, %107 : vector<64x128xf32>
    %109 = arith.maximumf %76, %108 : vector<64x128xf32>
    %110 = vector.broadcast %44 : vector<1x128xf32> to vector<64x128xf32>
    %111 = arith.addf %109, %110 : vector<64x128xf32>
    %cst_96 = arith.constant 0.000000e+00 : f32
    %112 = vector.broadcast %cst_96 : f32 to vector<64x128xf32>
    %113 = arith.maximumf %111, %112 : vector<64x128xf32>
    %114 = arith.truncf %113 : vector<64x128xf32> to vector<64x128xbf16>
    %115 = vector.extract_strided_slice %114 {offsets = [0, 0], sizes = [16, 128], strides = [1, 1]} : vector<64x128xbf16> to vector<16x128xbf16>
    %c0_97 = arith.constant 0 : index
    %c0_98 = arith.constant 0 : index
    %c0_99 = arith.constant 0 : index
    %116 = vector.load %arg6[%c0_97, %c0_98, %c0_99] : memref<4x128x50xbf16, #tpu.memory_space<vmem>>, vector<1x128x50xbf16>
    %117 = vector.shape_cast %116 : vector<1x128x50xbf16> to vector<128x50xbf16>
    %cst_100 = arith.constant dense<0.000000e+00> : vector<16x50xf32>
    %118 = tpu.matmul %115, %117, %cst_100 {dimension_numbers = #tpu.dot_dimension_numbers<[1], [0], [0], [1], [0, 0, 1, 1], [], []>} : vector<16x128xbf16>, vector<128x50xbf16>, vector<16x50xf32> -> vector<16x50xf32>
    %119 = vector.extract_strided_slice %114 {offsets = [16, 0], sizes = [16, 128], strides = [1, 1]} : vector<64x128xbf16> to vector<16x128xbf16>
    %c1_101 = arith.constant 1 : index
    %c0_102 = arith.constant 0 : index
    %c0_103 = arith.constant 0 : index
    %120 = vector.load %arg6[%c1_101, %c0_102, %c0_103] : memref<4x128x50xbf16, #tpu.memory_space<vmem>>, vector<1x128x50xbf16>
    %121 = vector.shape_cast %120 : vector<1x128x50xbf16> to vector<128x50xbf16>
    %cst_104 = arith.constant dense<0.000000e+00> : vector<16x50xf32>
    %122 = tpu.matmul %119, %121, %cst_104 {dimension_numbers = #tpu.dot_dimension_numbers<[1], [0], [0], [1], [0, 0, 1, 1], [], []>} : vector<16x128xbf16>, vector<128x50xbf16>, vector<16x50xf32> -> vector<16x50xf32>
    %123 = arith.addf %118, %122 : vector<16x50xf32>
    %124 = vector.extract_strided_slice %114 {offsets = [32, 0], sizes = [16, 128], strides = [1, 1]} : vector<64x128xbf16> to vector<16x128xbf16>
    %c2_105 = arith.constant 2 : index
    %c0_106 = arith.constant 0 : index
    %c0_107 = arith.constant 0 : index
    %125 = vector.load %arg6[%c2_105, %c0_106, %c0_107] : memref<4x128x50xbf16, #tpu.memory_space<vmem>>, vector<1x128x50xbf16>
    %126 = vector.shape_cast %125 : vector<1x128x50xbf16> to vector<128x50xbf16>
    %cst_108 = arith.constant dense<0.000000e+00> : vector<16x50xf32>
    %127 = tpu.matmul %124, %126, %cst_108 {dimension_numbers = #tpu.dot_dimension_numbers<[1], [0], [0], [1], [0, 0, 1, 1], [], []>} : vector<16x128xbf16>, vector<128x50xbf16>, vector<16x50xf32> -> vector<16x50xf32>
    %128 = arith.addf %123, %127 : vector<16x50xf32>
    %129 = vector.extract_strided_slice %114 {offsets = [48, 0], sizes = [16, 128], strides = [1, 1]} : vector<64x128xbf16> to vector<16x128xbf16>
    %c3_109 = arith.constant 3 : index
    %c0_110 = arith.constant 0 : index
    %c0_111 = arith.constant 0 : index
    %130 = vector.load %arg6[%c3_109, %c0_110, %c0_111] : memref<4x128x50xbf16, #tpu.memory_space<vmem>>, vector<1x128x50xbf16>
    %131 = vector.shape_cast %130 : vector<1x128x50xbf16> to vector<128x50xbf16>
    %cst_112 = arith.constant dense<0.000000e+00> : vector<16x50xf32>
    %132 = tpu.matmul %129, %131, %cst_112 {dimension_numbers = #tpu.dot_dimension_numbers<[1], [0], [0], [1], [0, 0, 1, 1], [], []>} : vector<16x128xbf16>, vector<128x50xbf16>, vector<16x50xf32> -> vector<16x50xf32>
    %133 = arith.addf %128, %132 : vector<16x50xf32>
    %c0_113 = arith.constant 0 : index
    %c0_114 = arith.constant 0 : index
    %134 = vector.load %arg7[%c0_113, %c0_114] : memref<1x50xf32, #tpu.memory_space<vmem>>, vector<1x50xf32>
    %135 = vector.broadcast %134 : vector<1x50xf32> to vector<16x50xf32>
    %136 = arith.addf %133, %135 : vector<16x50xf32>
    %cst_115 = arith.constant 0.000000e+00 : f32
    %137 = vector.broadcast %cst_115 : f32 to vector<16x50xf32>
    %138 = arith.maximumf %136, %137 : vector<16x50xf32>
    %139 = arith.truncf %138 : vector<16x50xf32> to vector<16x50xbf16>
    %c0_116 = arith.constant 0 : index
    %c0_117 = arith.constant 0 : index
    %140 = vector.load %arg8[%c0_116, %c0_117] : memref<50x10xbf16, #tpu.memory_space<vmem>>, vector<50x10xbf16>
    %cst_118 = arith.constant dense<0.000000e+00> : vector<16x10xf32>
    %141 = tpu.matmul %139, %140, %cst_118 {dimension_numbers = #tpu.dot_dimension_numbers<[1], [0], [0], [1], [0, 0, 1, 1], [], []>} : vector<16x50xbf16>, vector<50x10xbf16>, vector<16x10xf32> -> vector<16x10xf32>
    %c0_119 = arith.constant 0 : index
    %c0_120 = arith.constant 0 : index
    %142 = vector.load %arg9[%c0_119, %c0_120] : memref<1x10xf32, #tpu.memory_space<vmem>>, vector<1x10xf32>
    %143 = vector.broadcast %142 : vector<1x10xf32> to vector<16x10xf32>
    %144 = arith.addf %141, %143 : vector<16x10xf32>
    %cst_121 = arith.constant dense<0xFF800000> : vector<16xf32>
    %145 = vector.multi_reduction <maximumf>, %144, %cst_121 [1] : vector<16x10xf32> to vector<16xf32>
    %146 = vector.shape_cast %145 : vector<16xf32> to vector<16x1xf32>
    %147 = vector.broadcast %146 : vector<16x1xf32> to vector<16x10xf32>
    %148 = arith.subf %144, %147 : vector<16x10xf32>
    %149 = math.exp %148 : vector<16x10xf32>
    %cst_122 = arith.constant dense<0.000000e+00> : vector<16xf32>
    %150 = vector.multi_reduction <add>, %149, %cst_122 [1] : vector<16x10xf32> to vector<16xf32>
    %151 = vector.shape_cast %150 : vector<16xf32> to vector<16x1xf32>
    %152 = math.log %151 : vector<16x1xf32>
    %153 = vector.broadcast %152 : vector<16x1xf32> to vector<16x10xf32>
    %154 = arith.subf %148, %153 : vector<16x10xf32>
    %c0_123 = arith.constant 0 : index
    %c0_124 = arith.constant 0 : index
    %c0_125 = arith.constant 0 : index
    %155 = vector.load %arg10[%c0_123, %c0_124, %c0_125] : memref<1x16x10xf32, #tpu.memory_space<vmem>>, vector<1x16x10xf32>
    %156 = vector.shape_cast %155 : vector<1x16x10xf32> to vector<16x10xf32>
    %157 = vector.shape_cast %154 : vector<16x10xf32> to vector<1x16x10xf32>
    tpu.vector_store %arg10[%c0_123, %c0_124, %c0_125], %157 {strides = array<i32>} : memref<1x16x10xf32, #tpu.memory_space<vmem>>, vector<1x16x10xf32>,
    return
  }
  func.func @transform_0(%arg0: i32) -> (i32, i32, i32, i32) {
    %c0_i32 = arith.constant 0 : i32
    %c0_i32_0 = arith.constant 0 : i32
    %c0_i32_1 = arith.constant 0 : i32
    %c0_i32_2 = arith.constant 0 : i32
    return %arg0, %c0_i32, %c0_i32_0, %c0_i32_1 : i32, i32, i32, i32
  }
  func.func @transform_1(%arg0: i32) -> (i32, i32) {
    %c0_i32 = arith.constant 0 : i32
    %c0_i32_0 = arith.constant 0 : i32
    %c0_i32_1 = arith.constant 0 : i32
    return %c0_i32, %c0_i32_0 : i32, i32
  }
  func.func @transform_2(%arg0: i32) -> (i32, i32) {
    %c0_i32 = arith.constant 0 : i32
    %c0_i32_0 = arith.constant 0 : i32
    %c0_i32_1 = arith.constant 0 : i32
    return %c0_i32, %c0_i32_0 : i32, i32
  }
  func.func @transform_3(%arg0: i32) -> (i32, i32, i32) {
    %c0_i32 = arith.constant 0 : i32
    %c0_i32_0 = arith.constant 0 : i32
    %c0_i32_1 = arith.constant 0 : i32
    %c0_i32_2 = arith.constant 0 : i32
    return %c0_i32, %c0_i32_0, %c0_i32_1 : i32, i32, i32
  }
  func.func @transform_4(%arg0: i32) -> (i32, i32) {
    %c0_i32 = arith.constant 0 : i32
    %c0_i32_0 = arith.constant 0 : i32
    %c0_i32_1 = arith.constant 0 : i32
    return %c0_i32, %c0_i32_0 : i32, i32
  }
  func.func @transform_5(%arg0: i32) -> (i32, i32, i32) {
    %c0_i32 = arith.constant 0 : i32
    %c0_i32_0 = arith.constant 0 : i32
    %c0_i32_1 = arith.constant 0 : i32
    %c0_i32_2 = arith.constant 0 : i32
    return %c0_i32, %c0_i32_0, %c0_i32_1 : i32, i32, i32
  }
  func.func @transform_6(%arg0: i32) -> (i32, i32) {
    %c0_i32 = arith.constant 0 : i32
    %c0_i32_0 = arith.constant 0 : i32
    %c0_i32_1 = arith.constant 0 : i32
    return %c0_i32, %c0_i32_0 : i32, i32
  }
  func.func @transform_7(%arg0: i32) -> (i32, i32) {
    %c0_i32 = arith.constant 0 : i32
    %c0_i32_0 = arith.constant 0 : i32
    %c0_i32_1 = arith.constant 0 : i32
    return %c0_i32, %c0_i32_0 : i32, i32
  }
  func.func @transform_8(%arg0: i32) -> (i32, i32) {
    %c0_i32 = arith.constant 0 : i32
    %c0_i32_0 = arith.constant 0 : i32
    %c0_i32_1 = arith.constant 0 : i32
    return %c0_i32, %c0_i32_0 : i32, i32
  }
  func.func @transform_9(%arg0: i32) -> (i32, i32, i32) {
    %c0_i32 = arith.constant 0 : i32
    %c0_i32_0 = arith.constant 0 : i32
    %c0_i32_1 = arith.constant 0 : i32
    return %arg0, %c0_i32, %c0_i32_0 : i32, i32, i32
  }
}

</mosaic_0001>

<bundles_post_ra>
// kernel: net_forward.1
= control target key start
LH: loop header
LB: loop body
LE: loop exit
PB: predicated region body
PF: predicated region fallthrough
CT: control target
= control target key end

     0   :  { %vm206_vm0 = vcmask 97280   ;;  %vm225_vm1 = vcmask 1045504   ;;  %vm3841_vm2 = vmmov 0   ;;  %vm2873_vm3 = vcmask 1040384   ;;  %s4999_s1 = inlined_call_operand.vmem [shape: bf16[140,256], index: 1, kind: input, shape index: {}]   ;;  %s5000_s0 = inlined_call_operand.vmem [shape: bf16[1,4,96,140], index: 0, kind: input, shape index: {}]   ;;  %s5001_s3 = inlined_call_operand.vmem [shape: bf16[5,128,256], index: 3, kind: input, shape index: {}]   ;;  %s5002_s2 = inlined_call_operand.vmem [shape: f32[1,128], index: 2, kind: input, shape index: {}]   ;;  %s5003_s5 = inlined_call_operand.vmem [shape: bf16[4,128,50], index: 5, kind: input, shape index: {}]   ;;  %s5004_s4 = inlined_call_operand.vmem [shape: f32[1,128], index: 4, kind: input, shape index: {}]   ;;  %s5005_s7 = inlined_call_operand.vmem [shape: bf16[50,10], index: 7, kind: input, shape index: {}]   ;;  %s5006_s6 = inlined_call_operand.vmem [shape: f32[1,50], index: 6, kind: input, shape index: {}]   ;;  %s5007_s8 = inlined_call_operand.vmem [shape: f32[1,10], index: 8, kind: input, shape index: {}]   ;;  %s5008_s9 = inlined_call_operand.vmem [shape: f32[1,16,10], index: 9, kind: output, shape index: {}]  }
   0x1   :  { %v3895_v0 = vld [vmem:[%s4999_s1 + $0x4] ss:$8 sps:$4 sm:$0xff]   ;;  %v3900_v1 = vld [vmem:[%s4999_s1] ss:$8 sps:$4 sm:$0xff]   ;;  %v3907_v2 = vld [vmem:[%s4999_s1 + $0x14] ss:$8 sps:$4 sm:$0xff]  }
   0x2   :  { %232 = vmatprep.subr.bf16.mxu0 %v3895_v0  ;;  %422 = vmatprep.subr.bf16.mxu1 %v3895_v0  ;;  %v3914_v3 = vld [vmem:[%s4999_s1 + $0x10] ss:$8 sps:$4 sm:$0xff]   ;;  %v3921_v4 = vld [vmem:[%s4999_s1 + $0x24] ss:$8 sps:$4 sm:$0xff]   ;;  %v3928_v5 = vld [vmem:[%s4999_s1 + $0x20] ss:$8 sps:$4 sm:$0xff]  }
   0x3   :  { %233 = vmatpush1.bf16.msra.mxu0 %v3900_v1  ;;  %423 = vmatpush1.bf16.msra.mxu1 %v3900_v1  ;;  %v3935_v6 = vld [vmem:[%s4999_s1 + $0x34] ss:$8 sps:$4 sm:$0xff]   ;;  %v3942_v7 = vld [vmem:[%s4999_s1 + $0x30] ss:$8 sps:$4 sm:$0xff]   ;;  %v3949_v8 = vld [vmem:[%s4999_s1 + $0x44] ss:$8 sps:$4 sm:$0xff]  }
   0x4   :  { %234 = vmatprep.subr.bf16.mxu0 %v3907_v2  ;;  %424 = vmatprep.subr.bf16.mxu1 %v3907_v2  ;;  %v3605_v9 = vld [vmem:[%s5000_s0 + $0x4] ss:$8 sps:$4 sm:$0xff]   ;;  %v3962_v11 = vld [vmem:[%s4999_s1 + $0x40] ss:$8 sps:$4 sm:$0xff]   ;;  %v3969_v12 = vld [vmem:[%s4999_s1 + $0x54] ss:$8 sps:$4 sm:$0xff]  }
   0x5   :  { %v3608_v10 = vld [vmem:[%s5000_s0 + $0x64] ss:$8 sps:$4 sm:$0xff]   ;;  %2980 = vmatprep.mubr.msk.bf16.mxu0 %vm206_vm0, %v3605_v9  ;;  %v3978_v13 = vld [vmem:[%s4999_s1 + $0x50] ss:$8 sps:$4 sm:$0xff]   ;;  %v3992_v15 = vld [vmem:[%s4999_s1 + $0x60] ss:$8 sps:$4 sm:$0xff]  }
   0x6   :  { %3011 = vmatprep.mubr.msk.bf16.mxu1 %vm206_vm0, %v3608_v10  ;;  %v3985_v14 = vld [vmem:[%s4999_s1 + $0x64] ss:$8 sps:$4 sm:$0xff]   ;;  %v3999_v16 = vld [vmem:[%s4999_s1 + $0x74] ss:$8 sps:$4 sm:$0xff]   ;;  %v4006_v17 = vld [vmem:[%s4999_s1 + $0x70] ss:$8 sps:$4 sm:$0xff]  }
   0x7   :  { %235 = vmatpush1.bf16.msra.mxu0 %v3914_v3  ;;  %425 = vmatpush1.bf16.msra.mxu1 %v3914_v3  ;;  %v4011_v18 = vld [vmem:[%s4999_s1 + $0x84] ss:$8 sps:$4 sm:$0x3f]   ;;  %v3602_v19 = vld [vmem:[%s4999_s1 + $0x80] ss:$8 sps:$4 sm:$0x3f]  }
   0x8   :  { %236 = vmatprep.subr.bf16.mxu0 %v3921_v4  ;;  %426 = vmatprep.subr.bf16.mxu1 %v3921_v4  ;;  %v4025_v20 = vsel %vm225_vm1, %v3602_v19, 0  ;;  %v3603_v21 = vld [vmem:[%s5000_s0] ss:$8 sps:$4 sm:$0xff]   ;;  %v3609_v23 = vld [vmem:[%s5000_s0 + $0x14] ss:$8 sps:$4 sm:$0xff]   ;;  %v3839_v19 = vmov 0  }
   0x9   :  { %v3606_v22 = vld [vmem:[%s5000_s0 + $0x60] ss:$8 sps:$4 sm:$0xff]   ;;  %v3611_v24 = vld [vmem:[%s5000_s0 + $0x74] ss:$8 sps:$4 sm:$0xff]   ;;  %v3613_v25 = vld [vmem:[%s5000_s0 + $0x10] ss:$8 sps:$4 sm:$0xff]  }
   0xa   :  { %v3614_v26 = vld [vmem:[%s5000_s0 + $0x70] ss:$8 sps:$4 sm:$0xff]   ;;  %v3615_v27 = vld [vmem:[%s5000_s0 + $0x24] ss:$8 sps:$4 sm:$0xff]   ;;  %v3619_v29 = vld [vmem:[%s5000_s0 + $0x20] ss:$8 sps:$4 sm:$0xff]  }
   0xb   :  { %237 = vmatpush1.bf16.msra.mxu0 %v3928_v5  ;;  %427 = vmatpush1.bf16.msra.mxu1 %v3928_v5  ;;  %v3617_v28 = vld [vmem:[%s5000_s0 + $0x84] ss:$8 sps:$4 sm:$0xff]   ;;  %v3620_v30 = vld [vmem:[%s5000_s0 + $0x80] ss:$8 sps:$4 sm:$0xff]   ;;  %v3621_v31 = vld [vmem:[%s5000_s0 + $0x34] ss:$8 sps:$4 sm:$0xff]  }
   0xc   :  { %238 = vmatprep.subr.bf16.mxu0 %v3935_v6  ;;  %428 = vmatprep.subr.bf16.mxu1 %v3935_v6  ;;  %v3623_v32 = vld [vmem:[%s5000_s0 + $0x94] ss:$8 sps:$4 sm:$0xff]   ;;  %v3625_v33 = vld [vmem:[%s5000_s0 + $0x30] ss:$8 sps:$4 sm:$0xff]   ;;  %v3627_v35 = vld [vmem:[%s5000_s0 + $0x44] ss:$8 sps:$4 sm:$0xff]  }
   0xd   :  { %v3626_v34 = vld [vmem:[%s5000_s0 + $0x90] ss:$8 sps:$4 sm:$0xff]   ;;  %v3629_v36 = vld [vmem:[%s5000_s0 + $0xa4] ss:$8 sps:$4 sm:$0xff]   ;;  %v3631_v37 = vld [vmem:[%s5000_s0 + $0x40] ss:$8 sps:$4 sm:$0xff]  }
   0xe   :  { %v3632_v38 = vld [vmem:[%s5000_s0 + $0xa0] ss:$8 sps:$4 sm:$0xff]   ;;  %v3633_v39 = vld [vmem:[%s5000_s0 + $0x54] ss:$8 sps:$4 sm:$0xff]   ;;  %v3677_v41 = vld [vmem:[%s5001_s3 + $0x84] ss:$8 sps:$4 sm:$0xff]  }
   0xf   :  { %239 = vmatpush1.bf16.msra.mxu0 %v3942_v7  ;;  %429 = vmatpush1.bf16.msra.mxu1 %v3942_v7  ;;  %v3635_v40 = vld [vmem:[%s5000_s0 + $0xb4] ss:$8 sps:$4 sm:$0xff]   ;;  %v3637_v42 = vld [vmem:[%s5000_s0 + $0x50] ss:$8 sps:$4 sm:$0xff]   ;;  %v3641_v44 = vld [vmem:[%s5000_s0 + $0xc4] ss:$8 sps:$4 sm:$0xff]  }
  0x10   :  { %240 = vmatprep.subr.bf16.mxu0 %v3949_v8  ;;  %430 = vmatprep.subr.bf16.mxu1 %v3949_v8  ;;  %v3638_v43 = vld [vmem:[%s5000_s0 + $0xb0] ss:$8 sps:$4 sm:$0xff]   ;;  %v3644_v45 = vld [vmem:[%s5000_s0 + $0x124] ss:$8 sps:$4 sm:$0xff]   ;;  %v3639_v46 = vld [vmem:[%s5000_s0 + $0xc0] ss:$8 sps:$4 sm:$0xff]  }
  0x11   :  { %v3642_v47 = vld [vmem:[%s5000_s0 + $0x120] ss:$8 sps:$4 sm:$0xff]   ;;  %v3645_v48 = vld [vmem:[%s5000_s0 + $0xd4] ss:$8 sps:$4 sm:$0xff]   ;;  %v3678_v52 = vld [vmem:[%s5001_s3 + $0x90] ss:$8 sps:$4 sm:$0xff]  }
  0x12   :  { %v3647_v49 = vld [vmem:[%s5000_s0 + $0x134] ss:$8 sps:$4 sm:$0xff]   ;;  %v3675_v50 = vld [vmem:[%s5001_s3 + $0x80] ss:$8 sps:$4 sm:$0xff]   ;;  %v3683_v53 = vld [vmem:[%s5001_s3 + $0xa4] ss:$8 sps:$4 sm:$0xff]  }
  0x13   :  { %241 = vmatpush1.bf16.msra.mxu0 %v3962_v11  ;;  %431 = vmatpush1.bf16.msra.mxu1 %v3962_v11  ;;  %v3680_v51 = vld [vmem:[%s5001_s3 + $0x94] ss:$8 sps:$4 sm:$0xff]   ;;  %v3649_v54 = vld [vmem:[%s5000_s0 + $0xd0] ss:$8 sps:$4 sm:$0xff]   ;;  %v3651_v56 = vld [vmem:[%s5000_s0 + $0xe4] ss:$8 sps:$4 sm:$0xff]  }
  0x14   :  { %242 = vmatprep.subr.bf16.mxu0 %v3969_v12  ;;  %432 = vmatprep.subr.bf16.mxu1 %v3969_v12  ;;  %v3650_v55 = vld [vmem:[%s5000_s0 + $0x130] ss:$8 sps:$4 sm:$0xff]   ;;  %v3653_v57 = vld [vmem:[%s5000_s0 + $0x144] ss:$8 sps:$4 sm:$0xff]   ;;  %v3681_v58 = vld [vmem:[%s5001_s3 + $0xa0] ss:$8 sps:$4 sm:$0xff]  }
  0x15   :  { %v3655_v59 = vld [vmem:[%s5000_s0 + $0xe0] ss:$8 sps:$4 sm:$0xff]   ;;  %v3657_v61 = vld [vmem:[%s5000_s0 + $0xf4] ss:$8 sps:$4 sm:$0xff]   ;;  %v3661_v63 = vld [vmem:[%s5000_s0 + $0xf0] ss:$8 sps:$4 sm:$0xff]  }
  0x16   :  { %v3656_v60 = vld [vmem:[%s5000_s0 + $0x140] ss:$8 sps:$4 sm:$0xff]   ;;  %v3659_v62 = vld [vmem:[%s5000_s0 + $0x154] ss:$8 sps:$4 sm:$0xff]   ;;  %v3674_v9 = vld [vmem:[%s5000_s0 + $0x170] ss:$8 sps:$4 sm:$0xff]  }
  0x17   :  { %243 = vmatpush1.bf16.msra.mxu0 %v3978_v13  ;;  %433 = vmatpush1.bf16.msra.mxu1 %v3978_v13  ;;  %v3684_v10 = vld [vmem:[%s5001_s3 + $0xb0] ss:$8 sps:$4 sm:$0xff]   ;;  %vm2869_vm4 = vcmask 408576   ;;  %vm2918_vm5 = vcmask 80896  }
  0x18   :  { %244 = vmatprep.subr.bf16.mxu0 %v3985_v14  ;;  %434 = vmatprep.subr.bf16.mxu1 %v3985_v14 }
  0x1b   :  { %245 = vmatpush1.bf16.msra.mxu0 %v3992_v15  ;;  %435 = vmatpush1.bf16.msra.mxu1 %v3992_v15 }
  0x1c   :  { %246 = vmatprep.subr.bf16.mxu0 %v3999_v16  ;;  %436 = vmatprep.subr.bf16.mxu1 %v3999_v16 }
  0x1f   :  { %247 = vmatpush1.bf16.msra.mxu0 %v4006_v17  ;;  %437 = vmatpush1.bf16.msra.mxu1 %v4006_v17 }
  0x20   :  { %2979 = vmatprep.subr.msk.bf16.mxu0 %vm225_vm1, %v4011_v18  ;;  %3010 = vmatprep.subr.msk.bf16.mxu1 %vm225_vm1, %v4011_v18 }
  0x23   :  { %249 = vmatpush1.bf16.msra.mxu0 %v4025_v20  ;;  %439 = vmatpush1.bf16.msra.mxu1 %v4025_v20 }
  0x24   :  { %666 = vmatprep.subr.bf16.mxu0 %v3895_v0  ;;  %856 = vmatprep.subr.bf16.mxu1 %v3895_v0  ;;  %v3662_v0 = vld [vmem:[%s5000_s0 + $0x150] ss:$8 sps:$4 sm:$0xff]  }
  0x26   :  { %265 = vmatmul.mubr.bf16.vlgmr.msra.gmra.mrb[0].mxu0 %v3603_v21  ;;  %455 = vmatmul.mubr.bf16.vlgmr.msra.gmra.mrb[0].mxu1 %v3606_v22 }
  0x27   :  { %667 = vmatpush1.bf16.msra.mxu0 %v3900_v1  ;;  %857 = vmatpush1.bf16.msra.mxu1 %v3900_v1  ;;  %v3663_v1 = vld [vmem:[%s5000_s0 + $0x104] ss:$8 sps:$4 sm:$0xff]  }
  0x28   :  { %668 = vmatprep.subr.bf16.mxu0 %v3907_v2  ;;  %858 = vmatprep.subr.bf16.mxu1 %v3907_v2  ;;  %v3665_v2 = vld [vmem:[%s5000_s0 + $0x164] ss:$8 sps:$4 sm:$0xff]  }
  0x29   :  { %2981 = vmatprep.mubr.msk.bf16.mxu0 %vm206_vm0, %v3609_v23  ;;  %3012 = vmatprep.mubr.msk.bf16.mxu1 %vm206_vm0, %v3611_v24 }
  0x2b   :  { %669 = vmatpush1.bf16.msra.mxu0 %v3914_v3  ;;  %859 = vmatpush1.bf16.msra.mxu1 %v3914_v3  ;;  %v3667_v3 = vld [vmem:[%s5000_s0 + $0x100] ss:$8 sps:$4 sm:$0xff]  }
  0x2c   :  { %670 = vmatprep.subr.bf16.mxu0 %v3921_v4  ;;  %860 = vmatprep.subr.bf16.mxu1 %v3921_v4  ;;  %v3668_v4 = vld [vmem:[%s5000_s0 + $0x160] ss:$8 sps:$4 sm:$0xff]  }
  0x2e   :  { %275 = vmatmul.mubr.bf16.gmra.mrb[4].mxu0 %v3613_v25  ;;  %465 = vmatmul.mubr.bf16.gmra.mrb[4].mxu1 %v3614_v26 }
  0x2f   :  { %671 = vmatpush1.bf16.msra.mxu0 %v3928_v5  ;;  %861 = vmatpush1.bf16.msra.mxu1 %v3928_v5  ;;  %v3669_v5 = vld [vmem:[%s5000_s0 + $0x114] ss:$8 sps:$4 sm:$0xff]  }
  0x30   :  { %2982 = vmatprep.mubr.msk.bf16.mxu0 %vm206_vm0, %v3615_v27  ;;  %3013 = vmatprep.mubr.msk.bf16.mxu1 %vm206_vm0, %v3617_v28 }
  0x31   :  { %672 = vmatprep.subr.bf16.mxu0 %v3935_v6  ;;  %862 = vmatprep.subr.bf16.mxu1 %v3935_v6  ;;  %v3671_v6 = vld [vmem:[%s5000_s0 + $0x174] ss:$8 sps:$4 sm:$0xff]  }
  0x33   :  { %673 = vmatpush1.bf16.msra.mxu0 %v3942_v7  ;;  %863 = vmatpush1.bf16.msra.mxu1 %v3942_v7  ;;  %v3686_v7 = vld [vmem:[%s5001_s3 + $0xb4] ss:$8 sps:$4 sm:$0xff]  }
  0x34   :  { %674 = vmatprep.subr.bf16.mxu0 %v3949_v8  ;;  %864 = vmatprep.subr.bf16.mxu1 %v3949_v8  ;;  %v3673_v8 = vld [vmem:[%s5000_s0 + $0x110] ss:$8 sps:$4 sm:$0xff]  }
  0x36   :  { %285 = vmatmul.mubr.bf16.gmra.mrb[8].mxu0 %v3619_v29  ;;  %475 = vmatmul.mubr.bf16.gmra.mrb[8].mxu1 %v3620_v30  ;;  %v4283_v29 = vld [vmem:[%s5002_s2] ss:$0 sm:$0xff] }
  0x37   :  { %2983 = vmatprep.mubr.msk.bf16.mxu0 %vm206_vm0, %v3621_v31  ;;  %3014 = vmatprep.mubr.msk.bf16.mxu1 %vm206_vm0, %v3623_v32 }
  0x38   :  { %675 = vmatpush1.bf16.msra.mxu0 %v3962_v11  ;;  %865 = vmatpush1.bf16.msra.mxu1 %v3962_v11  ;;  %v3689_v11 = vld [vmem:[%s5001_s3 + $0xc4] ss:$8 sps:$4 sm:$0xff]  }
  0x39   :  { %676 = vmatprep.subr.bf16.mxu0 %v3969_v12  ;;  %866 = vmatprep.subr.bf16.mxu1 %v3969_v12  ;;  %v3687_v12 = vld [vmem:[%s5001_s3 + $0xc0] ss:$8 sps:$4 sm:$0xff]  }
  0x3c   :  { %677 = vmatpush1.bf16.msra.mxu0 %v3978_v13  ;;  %867 = vmatpush1.bf16.msra.mxu1 %v3978_v13  ;;  %v3692_v13 = vld [vmem:[%s5001_s3 + $0xd4] ss:$8 sps:$4 sm:$0xff]  }
  0x3d   :  { %678 = vmatprep.subr.bf16.mxu0 %v3985_v14  ;;  %868 = vmatprep.subr.bf16.mxu1 %v3985_v14  ;;  %v3690_v14 = vld [vmem:[%s5001_s3 + $0xd0] ss:$8 sps:$4 sm:$0xff]  }
  0x3e   :  { %295 = vmatmul.mubr.bf16.gmra.mrb[12].mxu0 %v3625_v33  ;;  %485 = vmatmul.mubr.bf16.gmra.mrb[12].mxu1 %v3626_v34 }
  0x3f   :  { %2984 = vmatprep.mubr.msk.bf16.mxu0 %vm206_vm0, %v3627_v35  ;;  %3015 = vmatprep.mubr.msk.bf16.mxu1 %vm206_vm0, %v3629_v36 }
  0x40   :  { %679 = vmatpush1.bf16.msra.mxu0 %v3992_v15  ;;  %869 = vmatpush1.bf16.msra.mxu1 %v3992_v15  ;;  %v3695_v15 = vld [vmem:[%s5001_s3 + $0xe4] ss:$8 sps:$4 sm:$0xff]  }
  0x41   :  { %680 = vmatprep.subr.bf16.mxu0 %v3999_v16  ;;  %870 = vmatprep.subr.bf16.mxu1 %v3999_v16  ;;  %v3693_v16 = vld [vmem:[%s5001_s3 + $0xe0] ss:$8 sps:$4 sm:$0xff]  }
  0x44   :  { %681 = vmatpush1.bf16.msra.mxu0 %v4006_v17  ;;  %871 = vmatpush1.bf16.msra.mxu1 %v4006_v17  ;;  %v3698_v17 = vld [vmem:[%s5001_s3 + $0xf4] ss:$8 sps:$4 sm:$0xff]  }
  0x45   :  { %3042 = vmatprep.subr.msk.bf16.mxu0 %vm225_vm1, %v4011_v18  ;;  %3073 = vmatprep.subr.msk.bf16.mxu1 %vm225_vm1, %v4011_v18  ;;  %v3696_v18 = vld [vmem:[%s5001_s3 + $0xf0] ss:$8 sps:$4 sm:$0xff]  }
  0x46   :  { %305 = vmatmul.mubr.bf16.gmra.mrb[16].mxu0 %v3631_v37  ;;  %495 = vmatmul.mubr.bf16.gmra.mrb[16].mxu1 %v3632_v38 }
  0x47   :  { %2985 = vmatprep.mubr.msk.bf16.mxu0 %vm206_vm0, %v3633_v39  ;;  %3016 = vmatprep.mubr.msk.bf16.mxu1 %vm206_vm0, %v3635_v40 }
  0x48   :  { %683 = vmatpush1.bf16.msra.mxu0 %v4025_v20  ;;  %873 = vmatpush1.bf16.msra.mxu1 %v4025_v20  ;;  %v3701_v20 = vld [vmem:[%s5001_s3 + $0x4] ss:$8 sps:$4 sm:$0xff]  }
  0x49   :  { %1936 = vmatprep.subr.bf16.mxu1 %v3677_v41  ;;  %1132 = vmatprep.subr.bf16.mxu0 %v3677_v41 }
  0x4e   :  { %315 = vmatmul.mubr.bf16.gmra.mrb[20].mxu0 %v3637_v42  ;;  %505 = vmatmul.mubr.bf16.gmra.mrb[20].mxu1 %v3638_v43 }
  0x4f   :  { %3043 = vmatprep.mubr.msk.bf16.mxu0 %vm206_vm0, %v3641_v44  ;;  %3074 = vmatprep.mubr.msk.bf16.mxu1 %vm206_vm0, %v3644_v45 }
  0x56   :  { %699 = vmatmul.mubr.bf16.vlgmr.msra.gmra.mrb[24].mxu0 %v3639_v46  ;;  %889 = vmatmul.mubr.bf16.vlgmr.msra.gmra.mrb[24].mxu1 %v3642_v47 }
  0x57   :  { %3044 = vmatprep.mubr.msk.bf16.mxu0 %vm206_vm0, %v3645_v48  ;;  %3075 = vmatprep.mubr.msk.bf16.mxu1 %vm206_vm0, %v3647_v49 }
  0x58   :  { %1937 = vmatpush1.bf16.msra.mxu1 %v3675_v50  ;;  %1133 = vmatpush1.bf16.msra.mxu0 %v3675_v50 }
  0x59   :  { %1938 = vmatprep.subr.bf16.mxu1 %v3680_v51  ;;  %1134 = vmatprep.subr.bf16.mxu0 %v3680_v51 }
  0x5c   :  { %1939 = vmatpush1.bf16.msra.mxu1 %v3678_v52  ;;  %1135 = vmatpush1.bf16.msra.mxu0 %v3678_v52 }
  0x5d   :  { %1940 = vmatprep.subr.bf16.mxu1 %v3683_v53  ;;  %1136 = vmatprep.subr.bf16.mxu0 %v3683_v53 }
  0x5e   :  { %709 = vmatmul.mubr.bf16.gmra.mrb[28].mxu0 %v3649_v54  ;;  %899 = vmatmul.mubr.bf16.gmra.mrb[28].mxu1 %v3650_v55 }
  0x5f   :  { %3045 = vmatprep.mubr.msk.bf16.mxu0 %vm206_vm0, %v3651_v56  ;;  %3076 = vmatprep.mubr.msk.bf16.mxu1 %vm206_vm0, %v3653_v57 }
  0x60   :  { %1941 = vmatpush1.bf16.msra.mxu1 %v3681_v58  ;;  %1137 = vmatpush1.bf16.msra.mxu0 %v3681_v58 }
  0x61   :  { %1942 = vmatprep.subr.bf16.mxu1 %v3686_v7  ;;  %1138 = vmatprep.subr.bf16.mxu0 %v3686_v7 }
  0x64   :  { %1943 = vmatpush1.bf16.msra.mxu1 %v3684_v10  ;;  %1139 = vmatpush1.bf16.msra.mxu0 %v3684_v10  ;;  %v4301_v10 = vld [vmem:[%s5001_s3 + $0x14] ss:$8 sps:$4 sm:$0xff]  }
  0x65   :  { %1944 = vmatprep.subr.bf16.mxu1 %v3689_v11  ;;  %1140 = vmatprep.subr.bf16.mxu0 %v3689_v11 }
  0x66   :  { %719 = vmatmul.mubr.bf16.gmra.mrb[32].mxu0 %v3655_v59  ;;  %909 = vmatmul.mubr.bf16.gmra.mrb[32].mxu1 %v3656_v60 }
  0x67   :  { %3046 = vmatprep.mubr.msk.bf16.mxu0 %vm206_vm0, %v3657_v61  ;;  %3077 = vmatprep.mubr.msk.bf16.mxu1 %vm206_vm0, %v3659_v62 }
  0x68   :  { %1945 = vmatpush1.bf16.msra.mxu1 %v3687_v12  ;;  %1141 = vmatpush1.bf16.msra.mxu0 %v3687_v12 }
  0x69   :  { %1946 = vmatprep.subr.bf16.mxu1 %v3692_v13  ;;  %1142 = vmatprep.subr.bf16.mxu0 %v3692_v13  ;;  %v4310_v13 = vld [vmem:[%s5001_s3 + $0x10] ss:$8 sps:$4 sm:$0xff]  }
  0x6c   :  { %1947 = vmatpush1.bf16.msra.mxu1 %v3690_v14  ;;  %1143 = vmatpush1.bf16.msra.mxu0 %v3690_v14 }
  0x6d   :  { %1948 = vmatprep.subr.bf16.mxu1 %v3695_v15  ;;  %1144 = vmatprep.subr.bf16.mxu0 %v3695_v15 }
  0x6e   :  { %729 = vmatmul.mubr.bf16.gmra.mrb[36].mxu0 %v3661_v63  ;;  %919 = vmatmul.mubr.bf16.gmra.mrb[36].mxu1 %v3662_v0 }
  0x6f   :  { %3047 = vmatprep.mubr.msk.bf16.mxu0 %vm206_vm0, %v3663_v1  ;;  %3078 = vmatprep.mubr.msk.bf16.mxu1 %vm206_vm0, %v3665_v2 }
  0x70   :  { %1949 = vmatpush1.bf16.msra.mxu1 %v3693_v16  ;;  %1145 = vmatpush1.bf16.msra.mxu0 %v3693_v16 }
  0x71   :  { %1950 = vmatprep.subr.bf16.mxu1 %v3698_v17  ;;  %1146 = vmatprep.subr.bf16.mxu0 %v3698_v17  ;;  %v4317_v17 = vld [vmem:[%s5001_s3 + $0x24] ss:$8 sps:$4 sm:$0xff]  }
  0x74   :  { %1951 = vmatpush1.bf16.msra.mxu1 %v3696_v18  ;;  %1147 = vmatpush1.bf16.msra.mxu0 %v3696_v18 }
  0x75   :  { %2009 = vmatprep.subr.bf16.mxu1 %v3701_v20  ;;  %1285 = vmatprep.subr.bf16.mxu0 %v3701_v20 }
  0x76   :  { %739 = vmatmul.mubr.bf16.gmra.mrb[40].mxu0 %v3667_v3  ;;  %929 = vmatmul.mubr.bf16.gmra.mrb[40].mxu1 %v3668_v4 }
  0x77   :  { %3048 = vmatprep.mubr.msk.bf16.mxu0 %vm206_vm0, %v3669_v5  ;;  %3079 = vmatprep.mubr.msk.bf16.mxu1 %vm206_vm0, %v3671_v6  ;;  %v4294_v5 = vld [vmem:[%s5001_s3] ss:$8 sps:$4 sm:$0xff]  }
  0x7e   :  { %749 = vmatmul.mubr.bf16.gmra.mrb[44].mxu0 %v3673_v8  ;;  %939 = vmatmul.mubr.bf16.gmra.mrb[44].mxu1 %v3674_v9 }
  0x7f   :  { %1968 = vmatprep.mubr.bf16.mxu1 %v3839_v19  ;;  %1164 = vmatprep.mubr.bf16.mxu0 %v3839_v19 }
  0xf9   :  { %v266_v21 = vpop.f32.mrb[0].mxu0  ;;  %v456_v22 = vpop.f32.mrb[0].mxu1 }
  0xfa   :  { %v268_v23 = vpop.f32.mrb[1].mxu0  ;;  %v458_v24 = vpop.f32.mrb[1].mxu1 }
  0xfb   :  { %v325_v25 = vmax.f32 %v266_v21, %v268_v23  ;;  %v515_v26 = vmax.f32 %v456_v22, %v458_v24  ;;  %v270_v27 = vpop.f32.mrb[2].mxu0  ;;  %v460_v28 = vpop.f32.mrb[2].mxu1 }
  0xfc   :  { %v272_v30 = vpop.f32.mrb[3].mxu0  ;;  %v462_v31 = vpop.f32.mrb[3].mxu1 }
  0xfd   :  { %v527_v32 = vmax.f32 %v325_v25, %v515_v26  ;;  %v326_v33 = vmax.f32 %v270_v27, %v272_v30  ;;  %v516_v34 = vmax.f32 %v460_v28, %v462_v31  ;;  %v4323_v30 = vld [vmem:[%s5001_s3 + $0x20] ss:$8 sps:$4 sm:$0xff]  }
  0xff   :  { %v545_v35 = vadd.f32 %v4283_v29, %v527_v32  ;;  %v528_v36 = vmax.f32 %v326_v33, %v516_v34 }
 0x101   :  { %v546_v37 = vadd.f32 %v4283_v29, %v528_v36  ;;  %v276_v38 = vpop.f32.mrb[4].mxu0  ;;  %v466_v39 = vpop.f32.mrb[4].mxu1  ;;  %v557_v42 = vmax.f32 %v545_v35, 0.0  ;;  %v4331_v35 = vld [vmem:[%s5001_s3 + $0x34] ss:$8 sps:$4 sm:$0xff]  }
 0x102   :  { %v278_v40 = vpop.f32.mrb[5].mxu0  ;;  %v468_v41 = vpop.f32.mrb[5].mxu1 }
 0x103   :  { %v558_v43 = vmax.f32 %v546_v37, 0.0  ;;  %v327_v44 = vmax.f32 %v276_v38, %v278_v40  ;;  %v517_v45 = vmax.f32 %v466_v39, %v468_v41  ;;  %v280_v46 = vpop.f32.mrb[6].mxu0  ;;  %v470_v47 = vpop.f32.mrb[6].mxu1  ;;  %v4340_v38 = vld [vmem:[%s5001_s3 + $0x30] ss:$8 sps:$4 sm:$0xff]  }
 0x104   :  { %v282_v48 = vpop.f32.mrb[7].mxu0  ;;  %v472_v49 = vpop.f32.mrb[7].mxu1 }
 0x105   :  { %v4287_v50 = vpack.c.bf16 %v558_v43, %v557_v42  ;;  %v529_v51 = vmax.f32 %v327_v44, %v517_v45  ;;  %v328_v52 = vmax.f32 %v280_v46, %v282_v48  ;;  %v518_v53 = vmax.f32 %v470_v47, %v472_v49  ;;  %v4347_v42 = vld [vmem:[%s5001_s3 + $0x44] ss:$8 sps:$4 sm:$0xff]  }
 0x107   :  { %v547_v54 = vadd.f32 %v4283_v29, %v529_v51  ;;  %v530_v55 = vmax.f32 %v328_v52, %v518_v53 }
 0x109   :  { %v548_v56 = vadd.f32 %v4283_v29, %v530_v55  ;;  %v286_v57 = vpop.f32.mrb[8].mxu0  ;;  %v476_v58 = vpop.f32.mrb[8].mxu1  ;;  %v559_v61 = vmax.f32 %v547_v54, 0.0  ;;  %v4353_v54 = vld [vmem:[%s5001_s3 + $0x40] ss:$8 sps:$4 sm:$0xff]  }
 0x10a   :  { %v288_v59 = vpop.f32.mrb[9].mxu0  ;;  %v478_v60 = vpop.f32.mrb[9].mxu1 }
 0x10b   :  { %v560_v62 = vmax.f32 %v548_v56, 0.0  ;;  %v329_v63 = vmax.f32 %v286_v57, %v288_v59  ;;  %v519_v0 = vmax.f32 %v476_v58, %v478_v60  ;;  %v290_v1 = vpop.f32.mrb[10].mxu0  ;;  %v480_v2 = vpop.f32.mrb[10].mxu1  ;;  %v4361_v59 = vld [vmem:[%s5001_s3 + $0x54] ss:$8 sps:$4 sm:$0xff]  }
 0x10c   :  { %v292_v3 = vpop.f32.mrb[11].mxu0  ;;  %v482_v4 = vpop.f32.mrb[11].mxu1 }
 0x10d   :  { %v4296_v6 = vpack.c.bf16 %v560_v62, %v559_v61  ;;  %v531_v7 = vmax.f32 %v329_v63, %v519_v0  ;;  %v330_v8 = vmax.f32 %v290_v1, %v292_v3  ;;  %v520_v9 = vmax.f32 %v480_v2, %v482_v4  ;;  %v4370_v62 = vld [vmem:[%s5001_s3 + $0x50] ss:$8 sps:$4 sm:$0xff]   ;;  %v4377_v2 = vld [vmem:[%s5001_s3 + $0x64] ss:$8 sps:$4 sm:$0xff]  }
 0x10f   :  { %v549_v11 = vadd.f32 %v4283_v29, %v531_v7  ;;  %v532_v12 = vmax.f32 %v330_v8, %v520_v9  ;;  %1969 = vmatmul.mubr.bf16.vlgmr.msra.gmra.mrb[48].mxu1 %v4296_v6 }
 0x110   :  { %1978 = vmatprep.mubr.bf16.mxu1 %v3839_v19  ;;  %2010 = vmatpush1.bf16.msra.mxu1 %v4294_v5 }
 0x111   :  { %v550_v14 = vadd.f32 %v4283_v29, %v532_v12  ;;  %v296_v15 = vpop.f32.mrb[12].mxu0  ;;  %v486_v16 = vpop.f32.mrb[12].mxu1  ;;  %2011 = vmatprep.subr.bf16.mxu1 %v4301_v10  ;;  %v561_v21 = vmax.f32 %v549_v11, 0.0 }
 0x112   :  { %v298_v18 = vpop.f32.mrb[13].mxu0  ;;  %v488_v20 = vpop.f32.mrb[13].mxu1 }
 0x113   :  { %v562_v22 = vmax.f32 %v550_v14, 0.0  ;;  %v331_v23 = vmax.f32 %v296_v15, %v298_v18  ;;  %v521_v24 = vmax.f32 %v486_v16, %v488_v20  ;;  %v300_v25 = vpop.f32.mrb[14].mxu0  ;;  %v490_v26 = vpop.f32.mrb[14].mxu1  ;;  %v4383_v18 = vld [vmem:[%s5001_s3 + $0x60] ss:$8 sps:$4 sm:$0xff]  }
 0x114   :  { %v302_v27 = vpop.f32.mrb[15].mxu0  ;;  %v492_v28 = vpop.f32.mrb[15].mxu1  ;;  %2012 = vmatpush1.bf16.msra.mxu1 %v4310_v13 }
 0x115   :  { %v4325_v31 = vpack.c.bf16 %v562_v22, %v561_v21  ;;  %v533_v32 = vmax.f32 %v331_v23, %v521_v24  ;;  %v332_v33 = vmax.f32 %v300_v25, %v302_v27  ;;  %v522_v34 = vmax.f32 %v490_v26, %v492_v28  ;;  %2013 = vmatprep.subr.bf16.mxu1 %v4317_v17  ;;  %v4391_v24 = vld [vmem:[%s5001_s3 + $0x74] ss:$8 sps:$4 sm:$0xff]   ;;  %v4399_v27 = vld [vmem:[%s5001_s3 + $0x70] ss:$8 sps:$4 sm:$0xff]  }
 0x117   :  { %v551_v36 = vadd.f32 %v4283_v29, %v533_v32  ;;  %v534_v37 = vmax.f32 %v332_v33, %v522_v34  ;;  %1979 = vmatmul.mubr.bf16.gmra.mrb[52].mxu1 %v4325_v31  ;;  %v4407_v34 = vld [vmem:[%s5001_s3 + $0x104] ss:$8 sps:$4 sm:$0xff]  }
 0x118   :  { %1988 = vmatprep.mubr.bf16.mxu1 %v3839_v19  ;;  %2014 = vmatpush1.bf16.msra.mxu1 %v4323_v30 }
 0x119   :  { %v552_v39 = vadd.f32 %v4283_v29, %v534_v37  ;;  %v306_v40 = vpop.f32.mrb[16].mxu0  ;;  %v496_v41 = vpop.f32.mrb[16].mxu1  ;;  %2015 = vmatprep.subr.bf16.mxu1 %v4331_v35  ;;  %v563_v45 = vmax.f32 %v551_v36, 0.0 }
 0x11a   :  { %v308_v43 = vpop.f32.mrb[17].mxu0  ;;  %v498_v44 = vpop.f32.mrb[17].mxu1 }
 0x11b   :  { %v564_v46 = vmax.f32 %v552_v39, 0.0  ;;  %v333_v47 = vmax.f32 %v306_v40, %v308_v43  ;;  %v523_v48 = vmax.f32 %v496_v41, %v498_v44  ;;  %v310_v49 = vpop.f32.mrb[18].mxu0  ;;  %v500_v51 = vpop.f32.mrb[18].mxu1 }
 0x11c   :  { %v312_v52 = vpop.f32.mrb[19].mxu0  ;;  %v502_v53 = vpop.f32.mrb[19].mxu1  ;;  %2016 = vmatpush1.bf16.msra.mxu1 %v4340_v38 }
 0x11d   :  { %v4355_v55 = vpack.c.bf16 %v564_v46, %v563_v45  ;;  %v535_v56 = vmax.f32 %v333_v47, %v523_v48  ;;  %v334_v57 = vmax.f32 %v310_v49, %v312_v52  ;;  %v524_v58 = vmax.f32 %v500_v51, %v502_v53  ;;  %2017 = vmatprep.subr.bf16.mxu1 %v4347_v42 }
 0x11f   :  { %v553_v60 = vadd.f32 %v4283_v29, %v535_v56  ;;  %v536_v61 = vmax.f32 %v334_v57, %v524_v58  ;;  %1989 = vmatmul.mubr.bf16.gmra.mrb[56].mxu1 %v4355_v55 }
 0x120   :  { %1998 = vmatprep.mubr.bf16.mxu1 %v3839_v19  ;;  %2018 = vmatpush1.bf16.msra.mxu1 %v4353_v54 }
 0x121   :  { %v554_v63 = vadd.f32 %v4283_v29, %v536_v61  ;;  %v316_v0 = vpop.f32.mrb[20].mxu0  ;;  %v506_v1 = vpop.f32.mrb[20].mxu1  ;;  %2019 = vmatprep.subr.bf16.mxu1 %v4361_v59  ;;  %v565_v7 = vmax.f32 %v553_v60, 0.0 }
 0x122   :  { %v318_v3 = vpop.f32.mrb[21].mxu0  ;;  %v508_v4 = vpop.f32.mrb[21].mxu1 }
 0x123   :  { %v566_v8 = vmax.f32 %v554_v63, 0.0  ;;  %v335_v9 = vmax.f32 %v316_v0, %v318_v3  ;;  %v525_v11 = vmax.f32 %v506_v1, %v508_v4  ;;  %v320_v12 = vpop.f32.mrb[22].mxu0  ;;  %v510_v14 = vpop.f32.mrb[22].mxu1 }
 0x124   :  { %v322_v15 = vpop.f32.mrb[23].mxu0  ;;  %v512_v16 = vpop.f32.mrb[23].mxu1  ;;  %2020 = vmatpush1.bf16.msra.mxu1 %v4370_v62 }
 0x125   :  { %v4385_v20 = vpack.c.bf16 %v566_v8, %v565_v7  ;;  %v537_v21 = vmax.f32 %v335_v9, %v525_v11  ;;  %v336_v22 = vmax.f32 %v320_v12, %v322_v15  ;;  %v526_v23 = vmax.f32 %v510_v14, %v512_v16  ;;  %2021 = vmatprep.subr.bf16.mxu1 %v4377_v2  ;;  %v4418_v12 = vld [vmem:[%s5001_s3 + $0x100] ss:$8 sps:$4 sm:$0xff]  }
 0x127   :  { %v555_v25 = vadd.f32 %v4283_v29, %v537_v21  ;;  %v538_v26 = vmax.f32 %v336_v22, %v526_v23  ;;  %1999 = vmatmul.mubr.bf16.gmra.mrb[60].mxu1 %v4385_v20  ;;  %v4423_v22 = vld [vmem:[%s5001_s3 + $0x114] ss:$8 sps:$4 sm:$0xff]  }
 0x128   :  { %2022 = vmatpush1.bf16.msra.mxu1 %v4383_v18  ;;  %2041 = vmatprep.mubr.bf16.mxu1 %v3839_v19 }
 0x129   :  { %v556_v28 = vadd.f32 %v4283_v29, %v538_v26  ;;  %v700_v32 = vpop.f32.mrb[24].mxu0  ;;  %v890_v33 = vpop.f32.mrb[24].mxu1  ;;  %2023 = vmatprep.subr.bf16.mxu1 %v4391_v24  ;;  %v567_v39 = vmax.f32 %v555_v25, 0.0  ;;  %v4431_v26 = vld [vmem:[%s5001_s3 + $0x110] ss:$8 sps:$4 sm:$0xff]  }
 0x12a   :  { %v702_v36 = vpop.f32.mrb[25].mxu0  ;;  %v892_v37 = vpop.f32.mrb[25].mxu1 }
 0x12b   :  { %v568_v40 = vmax.f32 %v556_v28, 0.0  ;;  %v759_v41 = vmax.f32 %v700_v32, %v702_v36  ;;  %v949_v43 = vmax.f32 %v890_v33, %v892_v37  ;;  %v704_v44 = vpop.f32.mrb[26].mxu0  ;;  %v894_v45 = vpop.f32.mrb[26].mxu1 }
 0x12c   :  { %v706_v46 = vpop.f32.mrb[27].mxu0  ;;  %v896_v47 = vpop.f32.mrb[27].mxu1  ;;  %2024 = vmatpush1.bf16.msra.mxu1 %v4399_v27 }
 0x12d   :  { %v961_v48 = vmax.f32 %v759_v41, %v949_v43  ;;  %v760_v49 = vmax.f32 %v704_v44, %v706_v46  ;;  %v950_v51 = vmax.f32 %v894_v45, %v896_v47  ;;  %2082 = vmatprep.subr.bf16.mxu1 %v4407_v34  ;;  %v4411_v52 = vpack.c.bf16 %v568_v40, %v567_v39  ;;  %v4448_v47 = vld [vmem:[%s5001_s3 + $0x120] ss:$8 sps:$4 sm:$0xff]  }
 0x12f   :  { %v973_v53 = vadd.f32 %v4283_v29, %v961_v48  ;;  %v962_v56 = vmax.f32 %v760_v49, %v950_v51 }
 0x131   :  { %v974_v57 = vadd.f32 %v4283_v29, %v962_v56  ;;  %v710_v58 = vpop.f32.mrb[28].mxu0  ;;  %v900_v60 = vpop.f32.mrb[28].mxu1  ;;  %v985_v0 = vmax.f32 %v973_v53, 0.0  ;;  %v4456_v56 = vld [vmem:[%s5001_s3 + $0x134] ss:$8 sps:$4 sm:$0xff]  }
 0x132   :  { %v712_v61 = vpop.f32.mrb[29].mxu0  ;;  %v902_v63 = vpop.f32.mrb[29].mxu1 }
 0x133   :  { %v986_v1 = vmax.f32 %v974_v57, 0.0  ;;  %v761_v3 = vmax.f32 %v710_v58, %v712_v61  ;;  %v951_v4 = vmax.f32 %v900_v60, %v902_v63  ;;  %v714_v7 = vpop.f32.mrb[30].mxu0  ;;  %v904_v8 = vpop.f32.mrb[30].mxu1 }
 0x134   :  { %v716_v9 = vpop.f32.mrb[31].mxu0  ;;  %v906_v11 = vpop.f32.mrb[31].mxu1 }
 0x135   :  { %v997_v14 = vpack.c.bf16 %v986_v1, %v985_v0  ;;  %v963_v15 = vmax.f32 %v761_v3, %v951_v4  ;;  %v762_v16 = vmax.f32 %v714_v7, %v716_v9  ;;  %v952_v21 = vmax.f32 %v904_v8, %v906_v11 }
 0x137   :  { %v975_v23 = vadd.f32 %v4283_v29, %v963_v15  ;;  %v964_v25 = vmax.f32 %v762_v16, %v952_v21  ;;  %1165 = vmatmul.mubr.bf16.vlgmr.msra.gmra.mrb[48].mxu0 %v997_v14  ;;  %2042 = vmatmul.mubr.bf16.vlgmr.msra.gmra.mrb[48].mxu1 %v997_v14  ;;  %v4484_v14 = vld [vmem:[%s5001_s3 + $0x140] ss:$8 sps:$4 sm:$0xff]  }
 0x138   :  { %1286 = vmatpush1.bf16.msra.mxu0 %v4294_v5  ;;  %2083 = vmatpush1.bf16.msra.mxu1 %v4418_v12  ;;  %v4441_v5 = vld [vmem:[%s5001_s3 + $0x124] ss:$8 sps:$4 sm:$0xff]  }
 0x139   :  { %v976_v28 = vadd.f32 %v4283_v29, %v964_v25  ;;  %v720_v32 = vpop.f32.mrb[32].mxu0  ;;  %v910_v33 = vpop.f32.mrb[32].mxu1  ;;  %1287 = vmatprep.subr.bf16.mxu0 %v4301_v10  ;;  %2084 = vmatprep.subr.bf16.mxu1 %v4423_v22  ;;  %v987_v39 = vmax.f32 %v975_v23, 0.0  ;;  %v4492_v25 = vld [vmem:[%s5001_s3 + $0x154] ss:$8 sps:$4 sm:$0xff]  }
 0x13a   :  { %v722_v36 = vpop.f32.mrb[33].mxu0  ;;  %v912_v37 = vpop.f32.mrb[33].mxu1  ;;  %1174 = vmatprep.mubr.bf16.mxu0 %v3839_v19  ;;  %2051 = vmatprep.mubr.bf16.mxu1 %v3839_v19 }
 0x13b   :  { %v988_v40 = vmax.f32 %v976_v28, 0.0  ;;  %v763_v41 = vmax.f32 %v720_v32, %v722_v36  ;;  %v953_v43 = vmax.f32 %v910_v33, %v912_v37  ;;  %v724_v44 = vpop.f32.mrb[34].mxu0  ;;  %v914_v45 = vpop.f32.mrb[34].mxu1  ;;  %v4511_v33 = vld [vmem:[%s5001_s3 + $0x164] ss:$8 sps:$4 sm:$0xff]  }
 0x13c   :  { %v726_v10 = vpop.f32.mrb[35].mxu0  ;;  %v916_v46 = vpop.f32.mrb[35].mxu1  ;;  %1288 = vmatpush1.bf16.msra.mxu0 %v4310_v13  ;;  %2085 = vmatpush1.bf16.msra.mxu1 %v4431_v26 }
 0x13d   :  { %v4450_v48 = vpack.c.bf16 %v988_v40, %v987_v39  ;;  %v965_v49 = vmax.f32 %v763_v41, %v953_v43  ;;  %v764_v51 = vmax.f32 %v724_v44, %v726_v10  ;;  %v954_v53 = vmax.f32 %v914_v45, %v916_v46  ;;  %1289 = vmatprep.subr.bf16.mxu0 %v4317_v17  ;;  %v4467_v17 = vld [vmem:[%s5001_s3 + $0x130] ss:$8 sps:$4 sm:$0xff]   ;;  %v4520_v10 = vld [vmem:[%s5001_s3 + $0x160] ss:$8 sps:$4 sm:$0xff]  }
 0x13e   :  { %2086 = vmatprep.subr.bf16.mxu1 %v4441_v5 }
 0x13f   :  { %v977_v13 = vadd.f32 %v4283_v29, %v965_v49  ;;  %v966_v57 = vmax.f32 %v764_v51, %v954_v53  ;;  %1175 = vmatmul.mubr.bf16.gmra.mrb[52].mxu0 %v4450_v48  ;;  %2052 = vmatmul.mubr.bf16.gmra.mrb[52].mxu1 %v4450_v48  ;;  %v4529_v53 = vld [vmem:[%s5001_s3 + $0x174] ss:$8 sps:$4 sm:$0xff]  }
 0x140   :  { %1290 = vmatpush1.bf16.msra.mxu0 %v4323_v30  ;;  %2087 = vmatpush1.bf16.msra.mxu1 %v4448_v47  ;;  %v4477_v30 = vld [vmem:[%s5001_s3 + $0x144] ss:$8 sps:$4 sm:$0xff]  }
 0x141   :  { %v978_v58 = vadd.f32 %v4283_v29, %v966_v57  ;;  %v730_v60 = vpop.f32.mrb[36].mxu0  ;;  %v920_v61 = vpop.f32.mrb[36].mxu1  ;;  %1291 = vmatprep.subr.bf16.mxu0 %v4331_v35  ;;  %2088 = vmatprep.subr.bf16.mxu1 %v4456_v56  ;;  %v989_v1 = vmax.f32 %v977_v13, 0.0 }
 0x142   :  { %v732_v63 = vpop.f32.mrb[37].mxu0  ;;  %v922_v0 = vpop.f32.mrb[37].mxu1  ;;  %1184 = vmatprep.mubr.bf16.mxu0 %v3839_v19  ;;  %2061 = vmatprep.mubr.bf16.mxu1 %v3839_v19 }
 0x143   :  { %v990_v3 = vmax.f32 %v978_v58, 0.0  ;;  %v765_v4 = vmax.f32 %v730_v60, %v732_v63  ;;  %v955_v7 = vmax.f32 %v920_v61, %v922_v0  ;;  %v734_v8 = vpop.f32.mrb[38].mxu0  ;;  %v924_v9 = vpop.f32.mrb[38].mxu1  ;;  %v4546_v61 = vld [vmem:[%s5001_s3 + $0x184] ss:$8 sps:$4 sm:$0xff]  }
 0x144   :  { %v736_v35 = vpop.f32.mrb[39].mxu0  ;;  %v926_v11 = vpop.f32.mrb[39].mxu1  ;;  %1292 = vmatpush1.bf16.msra.mxu0 %v4340_v38  ;;  %2089 = vmatpush1.bf16.msra.mxu1 %v4467_v17 }
 0x145   :  { %v4486_v15 = vpack.c.bf16 %v990_v3, %v989_v1  ;;  %v967_v16 = vmax.f32 %v765_v4, %v955_v7  ;;  %v766_v21 = vmax.f32 %v734_v8, %v736_v35  ;;  %v956_v23 = vmax.f32 %v924_v9, %v926_v11  ;;  %1293 = vmatprep.subr.bf16.mxu0 %v4347_v42  ;;  %v4503_v42 = vld [vmem:[%s5001_s3 + $0x150] ss:$8 sps:$4 sm:$0xff]   ;;  %v4556_v35 = vld [vmem:[%s5001_s3 + $0x180] ss:$8 sps:$4 sm:$0xff]  }
 0x146   :  { %2090 = vmatprep.subr.bf16.mxu1 %v4477_v30 }
 0x147   :  { %v979_v38 = vadd.f32 %v4283_v29, %v967_v16  ;;  %v968_v28 = vmax.f32 %v766_v21, %v956_v23  ;;  %1185 = vmatmul.mubr.bf16.gmra.mrb[56].mxu0 %v4486_v15  ;;  %2062 = vmatmul.mubr.bf16.gmra.mrb[56].mxu1 %v4486_v15  ;;  %v4563_v23 = vld [vmem:[%s5001_s3 + $0x194] ss:$8 sps:$4 sm:$0xff]  }
 0x148   :  { %1294 = vmatpush1.bf16.msra.mxu0 %v4353_v54  ;;  %2091 = vmatpush1.bf16.msra.mxu1 %v4484_v14 }
 0x149   :  { %v980_v32 = vadd.f32 %v4283_v29, %v968_v28  ;;  %1295 = vmatprep.subr.bf16.mxu0 %v4361_v59  ;;  %2092 = vmatprep.subr.bf16.mxu1 %v4492_v25  ;;  %v740_v36 = vpop.f32.mrb[40].mxu0  ;;  %v930_v54 = vpop.f32.mrb[40].mxu1  ;;  %v991_v40 = vmax.f32 %v979_v38, 0.0 }
 0x14a   :  { %1194 = vmatprep.mubr.bf16.mxu0 %v3839_v19  ;;  %2071 = vmatprep.mubr.bf16.mxu1 %v3839_v19  ;;  %v742_v37 = vpop.f32.mrb[41].mxu0  ;;  %v932_v39 = vpop.f32.mrb[41].mxu1 }
 0x14b   :  { %v992_v41 = vmax.f32 %v980_v32, 0.0  ;;  %v767_v43 = vmax.f32 %v740_v36, %v742_v37  ;;  %v957_v44 = vmax.f32 %v930_v54, %v932_v39  ;;  %v744_v59 = vpop.f32.mrb[42].mxu0  ;;  %v934_v45 = vpop.f32.mrb[42].mxu1 }
 0x14c   :  { %1296 = vmatpush1.bf16.msra.mxu0 %v4370_v62  ;;  %2093 = vmatpush1.bf16.msra.mxu1 %v4503_v42  ;;  %v746_v46 = vpop.f32.mrb[43].mxu0  ;;  %v936_v49 = vpop.f32.mrb[43].mxu1 }
 0x14d   :  { %v4522_v51 = vpack.c.bf16 %v992_v41, %v991_v40  ;;  %1297 = vmatprep.subr.bf16.mxu0 %v4377_v2  ;;  %2094 = vmatprep.subr.bf16.mxu1 %v4511_v33  ;;  %v969_v62 = vmax.f32 %v767_v43, %v957_v44  ;;  %v768_v13 = vmax.f32 %v744_v59, %v746_v46  ;;  %v4539_v2 = vld [vmem:[%s5001_s3 + $0x170] ss:$8 sps:$4 sm:$0xff]   ;;  %v4690_v41 = vld [vmem:[%s5001_s3 + $0x200] ss:$8 sps:$4 sm:$0xff]   ;;  %v4697_v43 = vld [vmem:[%s5001_s3 + $0x214] ss:$8 sps:$4 sm:$0xff]  }
 0x14e   :  { %v958_v57 = vmax.f32 %v934_v45, %v936_v49  ;;  %v3774_v44 = vld [vmem:[%s5001_s3 + $0x210] ss:$8 sps:$4 sm:$0xff]   ;;  %v3779_v59 = vld [vmem:[%s5001_s3 + $0x224] ss:$8 sps:$4 sm:$0xff]   ;;  %v3782_v45 = vld [vmem:[%s5001_s3 + $0x234] ss:$8 sps:$4 sm:$0xff]  }
 0x14f   :  { %1195 = vmatmul.mubr.bf16.gmra.mrb[60].mxu0 %v4522_v51  ;;  %2072 = vmatmul.mubr.bf16.gmra.mrb[60].mxu1 %v4522_v51  ;;  %v981_v58 = vadd.f32 %v4283_v29, %v969_v62  ;;  %v3785_v46 = vld [vmem:[%s5001_s3 + $0x244] ss:$8 sps:$4 sm:$0xff]   ;;  %v3783_v49 = vld [vmem:[%s5001_s3 + $0x240] ss:$8 sps:$4 sm:$0xff]   ;;  %v3786_v62 = vld [vmem:[%s5001_s3 + $0x250] ss:$8 sps:$4 sm:$0xff]  }
 0x150   :  { %1298 = vmatpush1.bf16.msra.mxu0 %v4383_v18  ;;  %2095 = vmatpush1.bf16.msra.mxu1 %v4520_v10  ;;  %v970_v60 = vmax.f32 %v768_v13, %v958_v57  ;;  %v3791_v13 = vld [vmem:[%s5001_s3 + $0x264] ss:$8 sps:$4 sm:$0xff]   ;;  %v3789_v57 = vld [vmem:[%s5001_s3 + $0x260] ss:$8 sps:$4 sm:$0xff]  }
 0x151   :  { %1299 = vmatprep.subr.bf16.mxu0 %v4391_v24  ;;  %2096 = vmatprep.subr.bf16.mxu1 %v4529_v53  ;;  %v750_v63 = vpop.f32.mrb[44].mxu0  ;;  %v940_v0 = vpop.f32.mrb[44].mxu1  ;;  %v993_v18 = vmax.f32 %v981_v58, 0.0  ;;  %v3794_v58 = vld [vmem:[%s5001_s3 + $0x274] ss:$8 sps:$4 sm:$0xff]  }
 0x152   :  { %1317 = vmatprep.mubr.bf16.mxu0 %v3839_v19  ;;  %2114 = vmatprep.mubr.bf16.mxu1 %v3839_v19  ;;  %v982_v1 = vadd.f32 %v4283_v29, %v970_v60  ;;  %v752_v3 = vpop.f32.mrb[45].mxu0  ;;  %v942_v4 = vpop.f32.mrb[45].mxu1  ;;  %v3802_v60 = vld [vmem:[%s5003_s5 + $0x20] sm:$0xff]  }
 0x153   :  { %v769_v7 = vmax.f32 %v750_v63, %v752_v3  ;;  %v959_v24 = vmax.f32 %v940_v0, %v942_v4  ;;  %v754_v8 = vpop.f32.mrb[46].mxu0  ;;  %v944_v9 = vpop.f32.mrb[46].mxu1  ;;  %v3804_v63 = vld [vmem:[%s5003_s5 + $0x28] sm:$0xff]   ;;  %v3805_v0 = vld [vmem:[%s5003_s5 + $0x60] sm:$0xff]   ;;  %v3808_v3 = vld [vmem:[%s5003_s5 + $0x38] sm:$0xff]  }
 0x154   :  { %1300 = vmatpush1.bf16.msra.mxu0 %v4399_v27  ;;  %2097 = vmatpush1.bf16.msra.mxu1 %v4539_v2  ;;  %v994_v11 = vmax.f32 %v982_v1, 0.0  ;;  %v756_v16 = vpop.f32.mrb[47].mxu0  ;;  %v946_v21 = vpop.f32.mrb[47].mxu1  ;;  %v3807_v1 = vld [vmem:[%s5003_s5 + $0x68] sm:$0xff]   ;;  %v3809_v4 = vld [vmem:[%s5003_s5 + $0x70] sm:$0xff]  }
 0x155   :  { %1459 = vmatprep.subr.bf16.mxu0 %v4407_v34  ;;  %2171 = vmatprep.subr.bf16.mxu1 %v4546_v61  ;;  %v971_v27 = vmax.f32 %v769_v7, %v959_v24  ;;  %v770_v38 = vmax.f32 %v754_v8, %v756_v16  ;;  %v960_v28 = vmax.f32 %v944_v9, %v946_v21  ;;  %v4575_v34 = vld [vmem:[%s5001_s3 + $0x190] ss:$8 sps:$4 sm:$0xff]  }
 0x156   :  { %v4565_v32 = vpack.c.bf16 %v994_v11, %v993_v18  ;;  %v3806_v18 = vld [vmem:[%s5003_s5 + $0x30] sm:$0xff]   ;;  %v3811_v7 = vld [vmem:[%s5003_s5 + $0x78] sm:$0xff]  }
 0x157   :  { %1318 = vmatmul.mubr.bf16.vlgmr.msra.gmra.mrb[48].mxu0 %v4287_v50  ;;  %2115 = vmatmul.mubr.bf16.vlgmr.msra.gmra.mrb[48].mxu1 %v4450_v48  ;;  %v983_v36 = vadd.f32 %v4283_v29, %v971_v27  ;;  %v972_v54 = vmax.f32 %v770_v38, %v960_v28  ;;  %v4582_v50 = vld [vmem:[%s5001_s3 + $0x1a4] ss:$8 sps:$4 sm:$0xff]  }
 0x158   :  { %1460 = vmatpush1.bf16.msra.mxu0 %v4418_v12  ;;  %2172 = vmatpush1.bf16.msra.mxu1 %v4556_v35 }
 0x159   :  { %1461 = vmatprep.subr.bf16.mxu0 %v4423_v22  ;;  %2173 = vmatprep.subr.bf16.mxu1 %v4563_v23  ;;  %v995_v37 = vmax.f32 %v983_v36, 0.0  ;;  %v984_v39 = vadd.f32 %v4283_v29, %v972_v54  ;;  %v4592_v22 = vld [vmem:[%s5001_s3 + $0x1a0] ss:$8 sps:$4 sm:$0xff]   ;;  %v4599_v29 = vld [vmem:[%s5001_s3 + $0x1b4] ss:$8 sps:$4 sm:$0xff]  }
 0x15a   :  { %1327 = vmatprep.mubr.bf16.mxu0 %v3839_v19  ;;  %2124 = vmatprep.mubr.bf16.mxu1 %v3839_v19 }
 0x15b   :  { %v996_v12 = vmax.f32 %v984_v39, 0.0 }
 0x15c   :  { %1462 = vmatpush1.bf16.msra.mxu0 %v4431_v26  ;;  %2174 = vmatpush1.bf16.msra.mxu1 %v4575_v34  ;;  %v4610_v26 = vld [vmem:[%s5001_s3 + $0x1b0] ss:$8 sps:$4 sm:$0xff]  }
 0x15d   :  { %1463 = vmatprep.subr.bf16.mxu0 %v4441_v5  ;;  %2175 = vmatprep.subr.bf16.mxu1 %v4582_v50  ;;  %v4601_v40 = vpack.c.bf16 %v996_v12, %v995_v37  ;;  %v4617_v5 = vld [vmem:[%s5001_s3 + $0x1c4] ss:$8 sps:$4 sm:$0xff]  }
 0x15f   :  { %1328 = vmatmul.mubr.bf16.gmra.mrb[52].mxu0 %v4296_v6  ;;  %2125 = vmatmul.mubr.bf16.gmra.mrb[52].mxu1 %v4486_v15 }
 0x160   :  { %1464 = vmatpush1.bf16.msra.mxu0 %v4448_v47  ;;  %2176 = vmatpush1.bf16.msra.mxu1 %v4592_v22  ;;  %v4626_v47 = vld [vmem:[%s5001_s3 + $0x1c0] ss:$8 sps:$4 sm:$0xff]  }
 0x161   :  { %1465 = vmatprep.subr.bf16.mxu0 %v4456_v56  ;;  %2177 = vmatprep.subr.bf16.mxu1 %v4599_v29  ;;  %v4633_v56 = vld [vmem:[%s5001_s3 + $0x1d4] ss:$8 sps:$4 sm:$0xff]  }
 0x162   :  { %1337 = vmatprep.mubr.bf16.mxu0 %v3839_v19  ;;  %2134 = vmatprep.mubr.bf16.mxu1 %v3839_v19 }
 0x164   :  { %1466 = vmatpush1.bf16.msra.mxu0 %v4467_v17  ;;  %2178 = vmatpush1.bf16.msra.mxu1 %v4610_v26  ;;  %v4642_v17 = vld [vmem:[%s5001_s3 + $0x1d0] ss:$8 sps:$4 sm:$0xff]  }
 0x165   :  { %1467 = vmatprep.subr.bf16.mxu0 %v4477_v30  ;;  %2179 = vmatprep.subr.bf16.mxu1 %v4617_v5  ;;  %v4649_v30 = vld [vmem:[%s5001_s3 + $0x1e4] ss:$8 sps:$4 sm:$0xff]  }
 0x167   :  { %1338 = vmatmul.mubr.bf16.gmra.mrb[56].mxu0 %v4325_v31  ;;  %2135 = vmatmul.mubr.bf16.gmra.mrb[56].mxu1 %v4522_v51 }
 0x168   :  { %1468 = vmatpush1.bf16.msra.mxu0 %v4484_v14  ;;  %2180 = vmatpush1.bf16.msra.mxu1 %v4626_v47  ;;  %v4658_v14 = vld [vmem:[%s5001_s3 + $0x1e0] ss:$8 sps:$4 sm:$0xff]  }
 0x169   :  { %1469 = vmatprep.subr.bf16.mxu0 %v4492_v25  ;;  %2181 = vmatprep.subr.bf16.mxu1 %v4633_v56  ;;  %v4665_v25 = vld [vmem:[%s5001_s3 + $0x1f4] ss:$8 sps:$4 sm:$0xff]  }
 0x16a   :  { %1347 = vmatprep.mubr.bf16.mxu0 %v3839_v19  ;;  %2144 = vmatprep.mubr.bf16.mxu1 %v3839_v19 }
 0x16c   :  { %1470 = vmatpush1.bf16.msra.mxu0 %v4503_v42  ;;  %2182 = vmatpush1.bf16.msra.mxu1 %v4642_v17  ;;  %v4674_v42 = vld [vmem:[%s5001_s3 + $0x1f0] ss:$8 sps:$4 sm:$0xff]  }
 0x16d   :  { %1471 = vmatprep.subr.bf16.mxu0 %v4511_v33  ;;  %2183 = vmatprep.subr.bf16.mxu1 %v4649_v30  ;;  %v4681_v33 = vld [vmem:[%s5001_s3 + $0x204] ss:$8 sps:$4 sm:$0xff]  }
 0x16f   :  { %1348 = vmatmul.mubr.bf16.gmra.mrb[60].mxu0 %v4355_v55  ;;  %2145 = vmatmul.mubr.bf16.gmra.mrb[60].mxu1 %v4565_v32 }
 0x170   :  { %1472 = vmatpush1.bf16.msra.mxu0 %v4520_v10  ;;  %2184 = vmatpush1.bf16.msra.mxu1 %v4658_v14  ;;  %v3780_v10 = vld [vmem:[%s5001_s3 + $0x230] ss:$8 sps:$4 sm:$0xff]  }
 0x171   :  { %1473 = vmatprep.subr.bf16.mxu0 %v4529_v53  ;;  %2185 = vmatprep.subr.bf16.mxu1 %v4665_v25  ;;  %v3788_v53 = vld [vmem:[%s5001_s3 + $0x254] ss:$8 sps:$4 sm:$0xff]  }
 0x172   :  { %1491 = vmatprep.mubr.bf16.mxu0 %v3839_v19  ;;  %2203 = vmatprep.mubr.bf16.mxu1 %v3839_v19 }
 0x174   :  { %1474 = vmatpush1.bf16.msra.mxu0 %v4539_v2  ;;  %2186 = vmatpush1.bf16.msra.mxu1 %v4674_v42  ;;  %v3792_v2 = vld [vmem:[%s5001_s3 + $0x270] ss:$8 sps:$4 sm:$0xff]  }
 0x175   :  { %1649 = vmatprep.subr.bf16.mxu0 %v4546_v61  ;;  %2264 = vmatprep.subr.bf16.mxu1 %v4681_v33  ;;  %v3803_v61 = vld [vmem:[%s5003_s5 + $0x58] sm:$0xff]  }
 0x177   :  { %1492 = vmatmul.mubr.bf16.vlgmr.msra.gmra.mrb[48].mxu0 %v4296_v6  ;;  %2204 = vmatmul.mubr.bf16.vlgmr.msra.gmra.mrb[48].mxu1 %v4325_v31  ;;  %v3777_v6 = vld [vmem:[%s5001_s3 + $0x220] ss:$8 sps:$4 sm:$0xff]  }
 0x178   :  { %1650 = vmatpush1.bf16.msra.mxu0 %v4556_v35  ;;  %2265 = vmatpush1.bf16.msra.mxu1 %v4690_v41 }
 0x179   :  { %1651 = vmatprep.subr.bf16.mxu0 %v4563_v23  ;;  %2266 = vmatprep.subr.bf16.mxu1 %v4697_v43 }
 0x17a   :  { %1501 = vmatprep.mubr.bf16.mxu0 %v3839_v19  ;;  %2213 = vmatprep.mubr.bf16.mxu1 %v3839_v19 }
 0x17c   :  { %1652 = vmatpush1.bf16.msra.mxu0 %v4575_v34  ;;  %2267 = vmatpush1.bf16.msra.mxu1 %v3774_v44 }
 0x17d   :  { %1653 = vmatprep.subr.bf16.mxu0 %v4582_v50  ;;  %2268 = vmatprep.subr.bf16.mxu1 %v3779_v59 }
 0x17f   :  { %1502 = vmatmul.mubr.bf16.gmra.mrb[52].mxu0 %v4325_v31  ;;  %2214 = vmatmul.mubr.bf16.gmra.mrb[52].mxu1 %v4355_v55 }
 0x180   :  { %1654 = vmatpush1.bf16.msra.mxu0 %v4592_v22  ;;  %2269 = vmatpush1.bf16.msra.mxu1 %v3777_v6 }
 0x181   :  { %1655 = vmatprep.subr.bf16.mxu0 %v4599_v29  ;;  %2270 = vmatprep.subr.bf16.mxu1 %v3782_v45 }
 0x182   :  { %1511 = vmatprep.mubr.bf16.mxu0 %v3839_v19  ;;  %2223 = vmatprep.mubr.bf16.mxu1 %v3839_v19 }
 0x184   :  { %1656 = vmatpush1.bf16.msra.mxu0 %v4610_v26  ;;  %2271 = vmatpush1.bf16.msra.mxu1 %v3780_v10 }
 0x185   :  { %1657 = vmatprep.subr.bf16.mxu0 %v4617_v5  ;;  %2272 = vmatprep.subr.bf16.mxu1 %v3785_v46 }
 0x187   :  { %1512 = vmatmul.mubr.bf16.gmra.mrb[56].mxu0 %v4355_v55  ;;  %2224 = vmatmul.mubr.bf16.gmra.mrb[56].mxu1 %v4385_v20 }
 0x188   :  { %1658 = vmatpush1.bf16.msra.mxu0 %v4626_v47  ;;  %2273 = vmatpush1.bf16.msra.mxu1 %v3783_v49 }
 0x189   :  { %1659 = vmatprep.subr.bf16.mxu0 %v4633_v56  ;;  %2274 = vmatprep.subr.bf16.mxu1 %v3788_v53 }
 0x18a   :  { %1521 = vmatprep.mubr.bf16.mxu0 %v3839_v19  ;;  %2233 = vmatprep.mubr.bf16.mxu1 %v3839_v19 }
 0x18c   :  { %1660 = vmatpush1.bf16.msra.mxu0 %v4642_v17  ;;  %2275 = vmatpush1.bf16.msra.mxu1 %v3786_v62 }
 0x18d   :  { %1661 = vmatprep.subr.bf16.mxu0 %v4649_v30  ;;  %2276 = vmatprep.subr.bf16.mxu1 %v3791_v13 }
 0x18f   :  { %1522 = vmatmul.mubr.bf16.gmra.mrb[60].mxu0 %v4385_v20  ;;  %2234 = vmatmul.mubr.bf16.gmra.mrb[60].mxu1 %v4411_v52 }
 0x190   :  { %1662 = vmatpush1.bf16.msra.mxu0 %v4658_v14  ;;  %2277 = vmatpush1.bf16.msra.mxu1 %v3789_v57  ;;  %v4881_v14 = vld [vmem:[%s5004_s4] ss:$0 sm:$0xff] }
 0x191   :  { %1663 = vmatprep.subr.bf16.mxu0 %v4665_v25  ;;  %2278 = vmatprep.subr.bf16.mxu1 %v3794_v58 }
 0x192   :  { %1681 = vmatprep.mubr.bf16.mxu0 %v3839_v19  ;;  %2296 = vmatprep.mubr.bf16.mxu1 %v3839_v19 }
 0x194   :  { %1664 = vmatpush1.bf16.msra.mxu0 %v4674_v42  ;;  %2279 = vmatpush1.bf16.msra.mxu1 %v3792_v2 }
 0x195   :  { %1839 = vmatprep.subr.bf16.mxu0 %v4681_v33 }
 0x197   :  { %1682 = vmatmul.mubr.bf16.vlgmr.msra.gmra.mrb[48].mxu0 %v4450_v48  ;;  %2297 = vmatmul.mubr.bf16.vlgmr.msra.gmra.mrb[48].mxu1 %v4486_v15  ;;  %v3795_v48 = vld [vmem:[%s5003_s5] sm:$0xff]  }
 0x198   :  { %1840 = vmatpush1.bf16.msra.mxu0 %v4690_v41  ;;  %1691 = vmatprep.mubr.bf16.mxu0 %v3839_v19 }
 0x199   :  { %1841 = vmatprep.subr.bf16.mxu0 %v4697_v43  ;;  %2306 = vmatprep.mubr.bf16.mxu1 %v3839_v19 }
 0x19c   :  { %1842 = vmatpush1.bf16.msra.mxu0 %v3774_v44 }
 0x19d   :  { %1843 = vmatprep.subr.bf16.mxu0 %v3779_v59 }
 0x19f   :  { %1692 = vmatmul.mubr.bf16.gmra.mrb[52].mxu0 %v4486_v15  ;;  %2307 = vmatmul.mubr.bf16.gmra.mrb[52].mxu1 %v4522_v51  ;;  %v3840_v15 = vmov 0.0  }
 0x1a0   :  { %1844 = vmatpush1.bf16.msra.mxu0 %v3777_v6  ;;  %1701 = vmatprep.mubr.bf16.mxu0 %v3839_v19 }
 0x1a1   :  { %1845 = vmatprep.subr.bf16.mxu0 %v3782_v45  ;;  %2316 = vmatprep.mubr.bf16.mxu1 %v3839_v19 }
 0x1a2   :  { %3373 = vmatprep.subr.bf16.mxu1 %v3840_v15 }
 0x1a3   :  { %3374 = vmatpush3.bf16.msra.mxu1 %v3795_v48 }
 0x1a4   :  { %1846 = vmatpush1.bf16.msra.mxu0 %v3780_v10  ;;  %3375 = vmatprep.subr.bf16.mxu1 %v3840_v15 }
 0x1a5   :  { %1847 = vmatprep.subr.bf16.mxu0 %v3785_v46 }
 0x1a7   :  { %1702 = vmatmul.mubr.bf16.gmra.mrb[56].mxu0 %v4522_v51  ;;  %2317 = vmatmul.mubr.bf16.gmra.mrb[56].mxu1 %v4565_v32  ;;  %v3801_v51 = vld [vmem:[%s5003_s5 + $0x50] sm:$0xff]  }
 0x1a8   :  { %1848 = vmatpush1.bf16.msra.mxu0 %v3783_v49  ;;  %1711 = vmatprep.mubr.bf16.mxu0 %v3839_v19 }
 0x1a9   :  { %1849 = vmatprep.subr.bf16.mxu0 %v3788_v53  ;;  %2326 = vmatprep.mubr.bf16.mxu1 %v3839_v19 }
 0x1ac   :  { %1850 = vmatpush1.bf16.msra.mxu0 %v3786_v62  ;;  %v3810_v62 = vld [vmem:[%s5003_s5 + $0xc0] sm:$0xff]  }
 0x1ad   :  { %1851 = vmatprep.subr.bf16.mxu0 %v3791_v13 }
 0x1af   :  { %1712 = vmatmul.mubr.bf16.gmra.mrb[60].mxu0 %v4565_v32  ;;  %2327 = vmatmul.mubr.bf16.gmra.mrb[60].mxu1 %v4601_v40 }
 0x1b0   :  { %1852 = vmatpush1.bf16.msra.mxu0 %v3789_v57  ;;  %1871 = vmatprep.mubr.bf16.mxu0 %v3839_v19 }
 0x1b1   :  { %1853 = vmatprep.subr.bf16.mxu0 %v3794_v58  ;;  %3389 = vmatprep.mubr.msk.bf16.mxu1 %vm3841_vm2, %v3840_v15 }
 0x1b4   :  { %1854 = vmatpush1.bf16.msra.mxu0 %v3792_v2 }
 0x1b5   :  { %3353 = vmatprep.subr.bf16.mxu0 %v3840_v15 }
 0x1b7   :  { %1872 = vmatmul.mubr.bf16.vlgmr.msra.gmra.mrb[48].mxu0 %v4325_v31  ;;  %v3796_v31 = vld [vmem:[%s5003_s5 + $0x8] sm:$0xff]  }
 0x1b8   :  { %1881 = vmatprep.mubr.bf16.mxu0 %v3839_v19  ;;  %3376 = vmatpush3.bf16.msra.mxu1 %v3796_v31  ;;  %v3812_v31 = vld [vmem:[%s5003_s5 + $0xc8] sm:$0xff]  }
 0x1b9   :  { %3377 = vmatprep.subr.bf16.mxu1 %v3840_v15 }
 0x1bf   :  { %1882 = vmatmul.mubr.bf16.gmra.mrb[52].mxu0 %v4355_v55  ;;  %v3798_v55 = vld [vmem:[%s5003_s5 + $0x10] sm:$0xff]  }
 0x1c0   :  { %1891 = vmatprep.mubr.bf16.mxu0 %v3839_v19  ;;  %3378 = vmatpush3.bf16.msra.mxu1 %v3798_v55 }
 0x1c1   :  { %3379 = vmatprep.subr.bf16.mxu1 %v3840_v15 }
 0x1c7   :  { %1892 = vmatmul.mubr.bf16.gmra.mrb[56].mxu0 %v4385_v20  ;;  %v3799_v20 = vld [vmem:[%s5003_s5 + $0x48] sm:$0xff]  }
 0x1c8   :  { %1901 = vmatprep.mubr.bf16.mxu0 %v3839_v19  ;;  %v3797_v19 = vld [vmem:[%s5003_s5 + $0x40] sm:$0xff]  }
 0x1c9   :  { %3354 = vmatpush3.bf16.msra.mxu0 %v3797_v19 }
 0x1ca   :  { %3355 = vmatprep.subr.bf16.mxu0 %v3840_v15 }
 0x1cd   :  { %3356 = vmatpush3.bf16.msra.mxu0 %v3799_v20 }
 0x1ce   :  { %3357 = vmatprep.subr.bf16.mxu0 %v3840_v15 }
 0x1cf   :  { %1902 = vmatmul.mubr.bf16.gmra.mrb[60].mxu0 %v4411_v52  ;;  %v3800_v52 = vld [vmem:[%s5003_s5 + $0x18] sm:$0xff]  }
 0x1d0   :  { %3380 = vmatpush3.bf16.msra.mxu1 %v3800_v52  ;;  %3369 = vmatprep.mubr.msk.bf16.mxu0 %vm3841_vm2, %v3840_v15 }
 0x1d1   :  { %3381 = vmatprep.subr.bf16.mxu1 %v3840_v15  ;;  %3358 = vmatpush3.bf16.msra.mxu0 %v3801_v51 }
 0x1d2   :  { %3359 = vmatprep.subr.bf16.mxu0 %v3840_v15 }
 0x1d4   :  { %3382 = vmatpush3.bf16.msra.mxu1 %v3802_v60 }
 0x1d5   :  { %3383 = vmatprep.subr.bf16.mxu1 %v3840_v15  ;;  %3360 = vmatpush3.bf16.msra.mxu0 %v3803_v61 }
 0x1d6   :  { %3361 = vmatprep.subr.bf16.mxu0 %v3840_v15 }
 0x1d8   :  { %3384 = vmatpush3.bf16.msra.mxu1 %v3804_v63 }
 0x1d9   :  { %3385 = vmatprep.subr.bf16.mxu1 %v3840_v15  ;;  %3362 = vmatpush3.bf16.msra.mxu0 %v3805_v0  ;;  %v3813_v0 = vld [vmem:[%s5003_s5 + $0x80] sm:$0xff]  }
 0x1da   :  { %3363 = vmatprep.subr.bf16.mxu0 %v3840_v15 }
 0x1dc   :  { %3386 = vmatpush3.bf16.msra.mxu1 %v3806_v18  ;;  %v3814_v18 = vld [vmem:[%s5003_s5 + $0xd0] sm:$0xff]  }
 0x1dd   :  { %3387 = vmatprep.subr.bf16.mxu1 %v3840_v15  ;;  %3364 = vmatpush3.bf16.msra.mxu0 %v3807_v1 }
 0x1de   :  { %3365 = vmatprep.subr.bf16.mxu0 %v3840_v15 }
 0x1e0   :  { %3388 = vmatpush3.bf16.msra.mxu1 %v3808_v3 }
 0x1e1   :  { %3413 = vmatprep.subr.bf16.mxu1 %v3840_v15  ;;  %3366 = vmatpush3.bf16.msra.mxu0 %v3809_v4 }
 0x1e2   :  { %3367 = vmatprep.subr.bf16.mxu0 %v3840_v15 }
 0x1e5   :  { %3368 = vmatpush3.bf16.msra.mxu0 %v3811_v7 }
 0x1e6   :  { %3393 = vmatprep.subr.bf16.mxu0 %v3840_v15 }
 0x26a   :  { %v2298_v24 = vpop.f32.mrb[48].mxu1 }
 0x26b   :  { %v2300_v8 = vpop.f32.mrb[49].mxu1 }
 0x26c   :  { %v2353_v9 = vmax.f32 %v2298_v24, %v2300_v8  ;;  %v2302_v35 = vpop.f32.mrb[50].mxu1  ;;  %v3815_v8 = vld [vmem:[%s5003_s5 + $0x88] sm:$0xff]  }
 0x26d   :  { %v2304_v11 = vpop.f32.mrb[51].mxu1 }
 0x26e   :  { %v2354_v16 = vmax.f32 %v2302_v35, %v2304_v11 }
 0x272   :  { %v2308_v21 = vpop.f32.mrb[52].mxu1 }
 0x273   :  { %v2310_v23 = vpop.f32.mrb[53].mxu1 }
 0x274   :  { %v2355_v27 = vmax.f32 %v2308_v21, %v2310_v23  ;;  %v2312_v38 = vpop.f32.mrb[54].mxu1 }
 0x275   :  { %v2314_v28 = vpop.f32.mrb[55].mxu1 }
 0x276   :  { %v2356_v32 = vmax.f32 %v2312_v38, %v2314_v28 }
 0x27a   :  { %v2318_v36 = vpop.f32.mrb[56].mxu1 }
 0x27b   :  { %v2320_v54 = vpop.f32.mrb[57].mxu1 }
 0x27c   :  { %v2357_v34 = vmax.f32 %v2318_v36, %v2320_v54  ;;  %v2322_v50 = vpop.f32.mrb[58].mxu1  ;;  %v3818_v36 = vld [vmem:[%s5003_s5 + $0xe0] sm:$0xff]  }
 0x27d   :  { %v2324_v37 = vpop.f32.mrb[59].mxu1 }
 0x27e   :  { %v2358_v39 = vmax.f32 %v2322_v50, %v2324_v37 }
 0x282   :  { %v4866_v12 = vpop.f32.mrb[60].mxu1 }
 0x283   :  { %v4868_v22 = vpop.f32.mrb[61].mxu1 }
 0x284   :  { %v2359_v29 = vmax.f32 %v4866_v12, %v4868_v22  ;;  %v4872_v40 = vpop.f32.mrb[62].mxu1  ;;  %v3820_v12 = vld [vmem:[%s5003_s5 + $0xe8] sm:$0xff]  }
 0x285   :  { %v4874_v26 = vpop.f32.mrb[63].mxu1 }
 0x286   :  { %v2360_v5 = vmax.f32 %v4872_v40, %v4874_v26  ;;  %v3821_v40 = vld [vmem:[%s5003_s5 + $0xa0] sm:$0xff]   ;;  %v3822_v26 = vld [vmem:[%s5003_s5 + $0xf0] sm:$0xff]  }
 0x28a   :  { %v1873_v47 = vpop.f32.mrb[48].mxu0 }
 0x28b   :  { %v1875_v56 = vpop.f32.mrb[49].mxu0 }
 0x28c   :  { %v1928_v17 = vmax.f32 %v1873_v47, %v1875_v56  ;;  %v1877_v30 = vpop.f32.mrb[50].mxu0  ;;  %v3819_v47 = vld [vmem:[%s5003_s5 + $0x98] sm:$0xff]  }
 0x28d   :  { %v1879_v25 = vpop.f32.mrb[51].mxu0 }
 0x28e   :  { %v2361_v42 = vmax.f32 %v1928_v17, %v2353_v9  ;;  %v1929_v33 = vmax.f32 %v1877_v30, %v1879_v25  ;;  %v3816_v9 = vld [vmem:[%s5003_s5 + $0xd8] sm:$0xff]   ;;  %v3823_v17 = vld [vmem:[%s5003_s5 + $0xa8] sm:$0xff]  }
 0x28f   :  { %v3824_v30 = vld [vmem:[%s5003_s5 + $0xf8] sm:$0xff]  }
 0x290   :  { %v2375_v41 = vadd.f32 %v4881_v14, %v2361_v42  ;;  %v2362_v43 = vmax.f32 %v1929_v33, %v2354_v16  ;;  %v3826_v25 = vld [vmem:[%s5003_s5 + $0xb8] sm:$0xff]   ;;  %v3827_v42 = vld [vmem:[%s5005_s7] sm:$0xff]   ;;  %v3828_v33 = vld [vmem:[%s5005_s7 + $0x8] sm:$0xff]  }
 0x292   :  { %v2376_v44 = vadd.f32 %v4881_v14, %v2362_v43  ;;  %v1883_v59 = vpop.f32.mrb[52].mxu0  ;;  %v2383_v45 = vmax.f32 %v2375_v41, 0.0  ;;  %v3829_v41 = vld [vmem:[%s5005_s7 + $0x10] sm:$0xff]   ;;  %v3830_v43 = vld [vmem:[%s5005_s7 + $0x18] ss:$0 sps:$4 sm:$0x11]  }
 0x293   :  { %v1885_v6 = vpop.f32.mrb[53].mxu0 }
 0x294   :  { %v2384_v10 = vmax.f32 %v2376_v44, 0.0  ;;  %v1930_v46 = vmax.f32 %v1883_v59, %v1885_v6  ;;  %v1887_v49 = vpop.f32.mrb[54].mxu0  ;;  %v2875_v44 = vsel %vm2873_vm3, %v3830_v43, 0 }
 0x295   :  { %v1889_v53 = vpop.f32.mrb[55].mxu0 }
 0x296   :  { %v2391_v13 = vpack.c.bf16 %v2384_v10, %v2383_v45  ;;  %v2363_v57 = vmax.f32 %v1930_v46, %v2355_v27  ;;  %v1931_v58 = vmax.f32 %v1887_v49, %v1889_v53 }
 0x298   :  { %v2377_v2 = vadd.f32 %v4881_v14, %v2363_v57  ;;  %v2364_v48 = vmax.f32 %v1931_v58, %v2356_v32  ;;  %3390 = vmatmul.mubr.bf16.vlgmr.msra.gmra.mrb[64].mxu1 %v2391_v13  ;;  %v3817_v32 = vld [vmem:[%s5003_s5 + $0x90] sm:$0xff]  }
 0x299   :  { %3414 = vmatpush3.bf16.msra.mxu1 %v3810_v62  ;;  %3429 = vmatprep.mubr.msk.bf16.mxu1 %vm3841_vm2, %v3840_v15 }
 0x29a   :  { %v2378_v19 = vadd.f32 %v4881_v14, %v2364_v48  ;;  %v1893_v55 = vpop.f32.mrb[56].mxu0  ;;  %3415 = vmatprep.subr.bf16.mxu1 %v3840_v15  ;;  %v2385_v52 = vmax.f32 %v2377_v2, 0.0 }
 0x29b   :  { %v1895_v20 = vpop.f32.mrb[57].mxu0 }
 0x29c   :  { %v2386_v51 = vmax.f32 %v2378_v19, 0.0  ;;  %v1932_v60 = vmax.f32 %v1893_v55, %v1895_v20  ;;  %v1897_v61 = vpop.f32.mrb[58].mxu0  ;;  %v3305_v20 = vld [vmem:[%s5006_s6] ss:$0 sm:$0xff] }
 0x29d   :  { %3416 = vmatpush3.bf16.msra.mxu1 %v3812_v31  ;;  %v1899_v63 = vpop.f32.mrb[59].mxu0 }
 0x29e   :  { %v2392_v1 = vpack.c.bf16 %v2386_v51, %v2385_v52  ;;  %v2365_v3 = vmax.f32 %v1932_v60, %v2357_v34  ;;  %v1933_v4 = vmax.f32 %v1897_v61, %v1899_v63  ;;  %3417 = vmatprep.subr.bf16.mxu1 %v3840_v15 }
 0x2a0   :  { %v2379_v7 = vadd.f32 %v4881_v14, %v2365_v3  ;;  %v2366_v24 = vmax.f32 %v1933_v4, %v2358_v39  ;;  %3370 = vmatmul.mubr.bf16.vlgmr.msra.gmra.mrb[64].mxu0 %v2392_v1 }
 0x2a1   :  { %3394 = vmatpush3.bf16.msra.mxu0 %v3813_v0  ;;  %3418 = vmatpush3.bf16.msra.mxu1 %v3814_v18 }
 0x2a2   :  { %v2380_v35 = vadd.f32 %v4881_v14, %v2366_v24  ;;  %v1903_v11 = vpop.f32.mrb[60].mxu0  ;;  %3395 = vmatprep.subr.bf16.mxu0 %v3840_v15  ;;  %3419 = vmatprep.subr.bf16.mxu1 %v3840_v15  ;;  %v2387_v21 = vmax.f32 %v2379_v7, 0.0  ;;  %v3306_v7 = vld [vmem:[%s5007_s8] ss:$0 sm:$0xff] }
 0x2a3   :  { %v1905_v16 = vpop.f32.mrb[61].mxu0  ;;  %3409 = vmatprep.mubr.msk.bf16.mxu0 %vm3841_vm2, %v3840_v15 }
 0x2a4   :  { %v2388_v23 = vmax.f32 %v2380_v35, 0.0  ;;  %v1934_v27 = vmax.f32 %v1903_v11, %v1905_v16  ;;  %v1907_v38 = vpop.f32.mrb[62].mxu0 }
 0x2a5   :  { %3396 = vmatpush3.bf16.msra.mxu0 %v3815_v8  ;;  %3420 = vmatpush3.bf16.msra.mxu1 %v3816_v9  ;;  %v1909_v28 = vpop.f32.mrb[63].mxu0 }
 0x2a6   :  { %v2393_v54 = vpack.c.bf16 %v2388_v23, %v2387_v21  ;;  %v2367_v34 = vmax.f32 %v1934_v27, %v2359_v29  ;;  %v1935_v50 = vmax.f32 %v1907_v38, %v1909_v28  ;;  %3397 = vmatprep.subr.bf16.mxu0 %v3840_v15  ;;  %3421 = vmatprep.subr.bf16.mxu1 %v3840_v15 }
 0x2a8   :  { %v2381_v37 = vadd.f32 %v4881_v14, %v2367_v34  ;;  %v2368_v39 = vmax.f32 %v1935_v50, %v2360_v5 }
 0x2a9   :  { %3398 = vmatpush3.bf16.msra.mxu0 %v3817_v32  ;;  %3422 = vmatpush3.bf16.msra.mxu1 %v3818_v36 }
 0x2aa   :  { %v2382_v22 = vadd.f32 %v4881_v14, %v2368_v39  ;;  %3399 = vmatprep.subr.bf16.mxu0 %v3840_v15  ;;  %3423 = vmatprep.subr.bf16.mxu1 %v3840_v15  ;;  %v2389_v29 = vmax.f32 %v2381_v37, 0.0  ;;  %v3825_v14 = vld [vmem:[%s5003_s5 + $0xb0] sm:$0xff]  }
 0x2ac   :  { %v2390_v56 = vmax.f32 %v2382_v22, 0.0 }
 0x2ad   :  { %3400 = vmatpush3.bf16.msra.mxu0 %v3819_v47  ;;  %3424 = vmatpush3.bf16.msra.mxu1 %v3820_v12 }
 0x2ae   :  { %v2394_v5 = vpack.c.bf16 %v2390_v56, %v2389_v29  ;;  %3401 = vmatprep.subr.bf16.mxu0 %v3840_v15  ;;  %3425 = vmatprep.subr.bf16.mxu1 %v3840_v15 }
 0x2b1   :  { %3402 = vmatpush3.bf16.msra.mxu0 %v3821_v40  ;;  %3426 = vmatpush3.bf16.msra.mxu1 %v3822_v26 }
 0x2b2   :  { %3403 = vmatprep.subr.bf16.mxu0 %v3840_v15  ;;  %3427 = vmatprep.subr.bf16.mxu1 %v3840_v15 }
 0x2b5   :  { %3404 = vmatpush3.bf16.msra.mxu0 %v3823_v17  ;;  %3428 = vmatpush3.bf16.msra.mxu1 %v3824_v30 }
 0x2b6   :  { %3405 = vmatprep.subr.bf16.mxu0 %v3840_v15 }
 0x2b8   :  { %3430 = vmatmul.mubr.bf16.vlgmr.msra.gmra.mrb[68].mxu1 %v2394_v5 }
 0x2b9   :  { %3406 = vmatpush3.bf16.msra.mxu0 %v3825_v14 }
 0x2ba   :  { %3407 = vmatprep.subr.bf16.mxu0 %v3840_v15 }
 0x2bd   :  { %3408 = vmatpush3.bf16.msra.mxu0 %v3826_v25 }
 0x2be   :  { %3433 = vmatprep.subr.bf16.mxu0 %v3840_v15 }
 0x2c0   :  { %3410 = vmatmul.mubr.bf16.vlgmr.msra.gmra.mrb[68].mxu0 %v2393_v54 }
 0x2c1   :  { %3441 = vmatprep.mubr.msk.bf16.mxu0 %vm3841_vm2, %v3840_v15  ;;  %3434 = vmatpush3.bf16.msra.mxu0 %v3827_v42 }
 0x2c2   :  { %3435 = vmatprep.subr.bf16.mxu0 %v3840_v15 }
 0x2c5   :  { %3436 = vmatpush3.bf16.msra.mxu0 %v3828_v33 }
 0x2c6   :  { %3437 = vmatprep.subr.bf16.mxu0 %v3840_v15 }
 0x2c9   :  { %3438 = vmatpush3.bf16.msra.mxu0 %v3829_v41 }
 0x2ca   :  { %3439 = vmatprep.subr.bf16.mxu0 %v3840_v15 }
 0x2cd   :  { %3440 = vmatpush3.bf16.msra.mxu0 %v2875_v44 }
 0x36b   :  { %v2599_v59 = vpop.f32.mrb[64].mxu1 }
 0x36c   :  { %v3391_v6 = vpop.f32.mrb[65].mxu1 }
 0x36d   :  { %v2602_v45 = vpop.f32.mrb[66].mxu1 }
 0x36e   :  { %v3392_v10 = vpop.f32.mrb[67].mxu1 }
 0x373   :  { %v2510_v46 = vpop.f32.mrb[64].mxu0 }
 0x374   :  { %v2600_v49 = vadd.f32 %v2599_v59, %v2510_v46  ;;  %v3371_v53 = vpop.f32.mrb[65].mxu0 }
 0x375   :  { %v2513_v62 = vpop.f32.mrb[66].mxu0 }
 0x376   :  { %v2603_v13 = vadd.f32 %v2602_v45, %v2513_v62  ;;  %v3372_v57 = vpop.f32.mrb[67].mxu0 }
 0x38b   :  { %v2813_v58 = vpop.f32.mrb[68].mxu1 }
 0x38c   :  { %v3431_v2 = vpop.f32.mrb[69].mxu1 }
 0x38d   :  { %v2816_v15 = vpop.f32.mrb[70].mxu1 }
 0x38e   :  { %v3432_v48 = vpop.f32.mrb[71].mxu1 }
 0x393   :  { %v2705_v31 = vpop.f32.mrb[68].mxu0 }
 0x394   :  { %v2712_v19 = vadd.f32 %v2705_v31, %v2600_v49  ;;  %v3411_v55 = vpop.f32.mrb[69].mxu0 }
 0x395   :  { %v2708_v52 = vpop.f32.mrb[70].mxu0 }
 0x396   :  { %v2820_v51 = vadd.f32 %v2813_v58, %v2712_v19  ;;  %v2713_v60 = vadd.f32 %v2708_v52, %v2603_v13  ;;  %v3412_v61 = vpop.f32.mrb[71].mxu0 }
 0x398   :  { %v2829_v63 = vadd.f32 %v3305_v20, %v2820_v51  ;;  %v2821_v0 = vadd.f32 %v2816_v15, %v2713_v60 }
 0x39a   :  { %v2830_v18 = vadd.f32 %v3305_v20, %v2821_v0  ;;  %v2831_v1 = vmax.f32 %v2829_v63, 0.0 }
 0x39c   :  { %v2832_v3 = vmax.f32 %v2830_v18, 0.0 }
 0x39e   :  { %v2833_v4 = vpack.c.bf16 %v2832_v3, %v2831_v1 }
 0x3a0   :  { %3442 = vmatmul.mubr.msk.bf16.vlgmr.msra.gmra.mrb[72].mxu0 %vm2869_vm4, %v2833_v4 }
 0x473   :  { %v2911_v24 = vpop.f32.mrb[72].mxu0 }
 0x474   :  { %v2912_v8 = vadd.f32 %v3306_v7, %v2911_v24  ;;  %v3443_v9 = vpop.f32.mrb[73].mxu0 }
 0x475   :  { %v2914_v35 = vpop.f32.mrb[74].mxu0 }
 0x476   :  { %v2915_v11 = vadd.f32 %v3306_v7, %v2914_v35  ;;  %v3444_v16 = vpop.f32.mrb[75].mxu0  ;;  %v2919_v21 = vsel %vm2918_vm5, %v2912_v8, -inf }
 0x477   :  { %2920 = vmax.xlane.f32.xlu0 %v2919_v21 }
 0x478   :  { %v2922_v23 = vsel %vm2918_vm5, %v2915_v11, -inf }
 0x47b   :  { %2923 = vmax.xlane.f32.xlu0 %v2922_v23 }
 0x504   :  { %v2921_v27 = vpop.xlane.xlu0 %2920 }
 0x505   :  { %v2925_v38 = vsub.f32 %v2912_v8, %v2921_v27 }
 0x507   :  { %v2927_v28 = vmul.f32 1.442695, %v2925_v38 }
 0x508   :  { %v2924_v32 = vpop.xlane.xlu0 %2923 }
 0x509   :  { %3831 = vpow2.f32 %v2927_v28  ;;  %v2926_v36 = vsub.f32 %v2915_v11, %v2924_v32 }
 0x50b   :  { %v2929_v54 = vmul.f32 1.442695, %v2926_v36 }
 0x50d   :  { %3833 = vpow2.f32 %v2929_v54 }
 0x513   :  { %v3832_v34 = vpop.eup %3831 }
 0x514   :  { %v2931_v50 = vsel %vm2918_vm5, %v3832_v34, 0.0 }
 0x515   :  { %2932 = vadd.xlane.f32.xlu1 %v2931_v50 }
 0x517   :  { %v3834_v37 = vpop.eup %3833 }
 0x518   :  { %v2934_v39 = vsel %vm2918_vm5, %v3834_v37, 0.0 }
 0x519   :  { %2935 = vadd.xlane.f32.xlu1 %v2934_v39 }
 0x5a2   :  { %v2933_v47 = vpop.xlane.xlu1 %2932 }
 0x5a3   :  { %3835 = vlog2.f32 %v2933_v47 }
 0x5a6   :  { %v2936_v12 = vpop.xlane.xlu1 %2935 }
 0x5a7   :  { %3837 = vlog2.f32 %v2936_v12 }
 0x5ad   :  { %v3836_v22 = vpop.eup %3835 }
 0x5ae   :  { %v2938_v29 = vmul.f32 0.6931472, %v3836_v22 }
 0x5b0   :  { %v2941_v56 = vsub.f32 %v2925_v38, %v2938_v29 }
 0x5b1   :  { %v3838_v40 = vpop.eup %3837 }
 0x5b2   :  { %2943 = vst.msk [vmem:[%s5008_s9] sm:$0xff] %vm2918_vm5, %v2941_v56  ;;  %v2940_v26 = vmul.f32 0.6931472, %v3838_v40 }
 0x5b4   :  { %v2942_v5 = vsub.f32 %v2926_v36, %v2940_v26 }
 0x5b6   :  { %2944 = vst.msk [vmem:[%s5008_s9 + $0x8] sm:$0xff] %vm2918_vm5, %v2942_v5 }

</bundles_post_ra>
